<compile_context>
chip_gen: v7x
topology: tpu7x:2x2x1
jax: 0.10.0
libtpu: 0.0.40
codegen_flags: <defaults>
</compile_context>

<pallas_src>
import functools
import math

import jax
import jax.numpy as jnp
from jax.experimental import pallas as pl
from jax.experimental.pallas import tpu as pltpu


# ----------------------------- tiling helpers ------------------------------

def _fit_tile(dim, desired, floor):
    """Largest tile <= desired that divides dim (else the full dim)."""
    if dim <= desired:
        return dim
    t = desired
    while t >= floor:
        if dim % t == 0:
            return t
        t //= 2
    return dim


# ------------------------------ linear (+act) -------------------------------

def _linear_kernel(act, x_ref, w_ref, b_ref, o_ref):
    # y = x @ w + b  (nn.Linear semantics; w stored [in, out]); bf16 on the
    # MXU, fp32 accumulation + fp32 epilogue, full-K single pass.
    y = jnp.dot(x_ref[...], w_ref[...], preferred_element_type=jnp.float32)
    y = y + b_ref[...]
    if act == "gelu":            # exact (erf-based) GELU, as in BERT
        y = 0.5 * y * (1.0 + jax.lax.erf(y * (1.0 / math.sqrt(2.0))))
    elif act == "tanh":
        y = jnp.tanh(y)
    o_ref[...] = y.astype(o_ref.dtype)


def linear(x, w, b, act="none", out_dtype=jnp.bfloat16):
    M, K = x.shape
    N = w.shape[1]
    tm = _fit_tile(M, 256, 16)
    tn = _fit_tile(N, 256, 128)
    return pl.pallas_call(
        functools.partial(_linear_kernel, act),
        out_shape=jax.ShapeDtypeStruct((M, N), out_dtype),
        grid=(M // tm, N // tn),
        in_specs=[
            pl.BlockSpec((tm, K), lambda i, j: (i, 0)),
            pl.BlockSpec((K, tn), lambda i, j: (0, j)),
            pl.BlockSpec((1, tn), lambda i, j: (0, j)),
        ],
        out_specs=pl.BlockSpec((tm, tn), lambda i, j: (i, j)),
        compiler_params=pltpu.CompilerParams(
            dimension_semantics=("parallel", "parallel"),
            vmem_limit_bytes=48 * 1024 * 1024),
    )(x, w, b.reshape(1, N))


# ---------------- linear + residual add + LayerNorm (fused epilogue) --------

def _linear_res_ln_kernel(eps, x_ref, w_ref, b_ref, r_ref, g_ref, beta_ref,
                          o_ref):
    # y = LayerNorm((x @ w + b) + residual); full output row per block so the
    # LN reduction is local; LN math is VPU/XLU filler under the MXU matmul.
    y = jnp.dot(x_ref[...], w_ref[...], preferred_element_type=jnp.float32)
    y = y + b_ref[...] + r_ref[...].astype(jnp.float32)
    mu = jnp.mean(y, axis=-1, keepdims=True)
    var = jnp.mean(jnp.square(y - mu), axis=-1, keepdims=True)
    yn = (y - mu) * jax.lax.rsqrt(var + eps)
    o_ref[...] = (yn * g_ref[...] + beta_ref[...]).astype(o_ref.dtype)


def linear_res_ln(x, w, b, residual, gamma, beta, eps=1e-12,
                  out_dtype=jnp.bfloat16):
    M, K = x.shape
    N = w.shape[1]
    tm = _fit_tile(M, 256, 16)
    return pl.pallas_call(
        functools.partial(_linear_res_ln_kernel, eps),
        out_shape=jax.ShapeDtypeStruct((M, N), out_dtype),
        grid=(M // tm,),
        in_specs=[
            pl.BlockSpec((tm, K), lambda i: (i, 0)),
            pl.BlockSpec((K, N), lambda i: (0, 0)),
            pl.BlockSpec((1, N), lambda i: (0, 0)),
            pl.BlockSpec((tm, N), lambda i: (i, 0)),
            pl.BlockSpec((1, N), lambda i: (0, 0)),
            pl.BlockSpec((1, N), lambda i: (0, 0)),
        ],
        out_specs=pl.BlockSpec((tm, N), lambda i: (i, 0)),
        compiler_params=pltpu.CompilerParams(
            dimension_semantics=("parallel",),
            vmem_limit_bytes=48 * 1024 * 1024),
    )(x, w, b.reshape(1, N), residual, gamma.reshape(1, N), beta.reshape(1, N))


# ------------------------------ LayerNorm ------------------------------------

def _ln_kernel(eps, x_ref, g_ref, b_ref, o_ref):
    x = x_ref[...].astype(jnp.float32)
    mu = jnp.mean(x, axis=-1, keepdims=True)
    var = jnp.mean(jnp.square(x - mu), axis=-1, keepdims=True)
    xn = (x - mu) * jax.lax.rsqrt(var + eps)
    o_ref[...] = (xn * g_ref[...] + b_ref[...]).astype(o_ref.dtype)


def layer_norm(x, g, b, eps=1e-12, out_dtype=jnp.bfloat16):
    M, H = x.shape
    tm = _fit_tile(M, 512, 16)       # mem-bound: bigger row tiles
    return pl.pallas_call(
        functools.partial(_ln_kernel, eps),
        out_shape=jax.ShapeDtypeStruct((M, H), out_dtype),
        grid=(M // tm,),
        in_specs=[
            pl.BlockSpec((tm, H), lambda i: (i, 0)),
            pl.BlockSpec((1, H), lambda i: (0, 0)),
            pl.BlockSpec((1, H), lambda i: (0, 0)),
        ],
        out_specs=pl.BlockSpec((tm, H), lambda i: (i, 0)),
        compiler_params=pltpu.CompilerParams(
            dimension_semantics=("parallel",)),
    )(x, g.reshape(1, H), b.reshape(1, H))


# ------------------------------- attention -----------------------------------

def _attention_kernel(heads_per_grp, dh, q_ref, k_ref, v_ref, bias_ref, o_ref):
    # One (batch, 128-lane head group, query tile) per grid step.  Q/K/V are
    # static lane views of the fused QKV tensor; the 1/sqrt(Dh) scale is
    # already folded into the Q projection weights.
    bias = bias_ref[0]                                  # (1, S) additive mask
    # Phase 1: all QK^T matmuls back-to-back (transposed contraction on Dh).
    scores = []
    for h in range(heads_per_grp):
        qh = q_ref[0, :, h * dh:(h + 1) * dh]           # (tq, Dh) bf16
        kh = k_ref[0, :, h * dh:(h + 1) * dh]           # (S,  Dh) bf16
        scores.append(jax.lax.dot_general(
            qh, kh, (((1,), (1,)), ((), ())),
            preferred_element_type=jnp.float32))        # (tq, S) f32
    # Phase 2: masked softmax (VPU/EUP).
    probs = []
    for s in scores:
        s = s + bias
        s = s - jnp.max(s, axis=-1, keepdims=True)
        p = jnp.exp(s)
        p = p * pl.reciprocal(jnp.sum(p, axis=-1, keepdims=True), approx=True)
        probs.append(p)
    # Phase 3: P @ V matmuls back-to-back; single lane-dense bf16 store.
    ctx = [jnp.dot(probs[h].astype(v_ref.dtype),
                   v_ref[0, :, h * dh:(h + 1) * dh],
                   preferred_element_type=jnp.float32)
           for h in range(heads_per_grp)]
    o_ref[0] = jnp.concatenate(ctx, axis=-1).astype(o_ref.dtype)


def attention(qkv, mask_bias, n_heads):
    B, S, H3 = qkv.shape
    H = H3 // 3
    dh = H // n_heads
    assert H % 128 == 0 and 128 % dh == 0, "hidden must be 128-aligned"
    gw = 128                          # head-group lane width (2 heads @ Dh=64)
    hpg = gw // dh                    # heads per group
    n_grp = H // gw
    kv_base = H // gw                 # block-index offset of the K segment
    tq = _fit_tile(S, 128, 8)
    return pl.pallas_call(
        functools.partial(_attention_kernel, hpg, dh),
        out_shape=jax.ShapeDtypeStruct((B, S, H), jnp.bfloat16),
        grid=(B, n_grp, S // tq),
        in_specs=[
            # Three views of the same fused QKV tensor (Q / K / V lane ranges).
            pl.BlockSpec((1, tq, gw), lambda b, g, qi: (b, qi, g)),
            pl.BlockSpec((1, S, gw), lambda b, g, qi: (b, 0, kv_base + g)),
            pl.BlockSpec((1, S, gw), lambda b, g, qi: (b, 0, 2 * kv_base + g)),
            pl.BlockSpec((1, 1, S), lambda b, g, qi: (b, 0, 0)),
        ],
        out_specs=pl.BlockSpec((1, tq, gw), lambda b, g, qi: (b, qi, g)),
        compiler_params=pltpu.CompilerParams(
            dimension_semantics=("parallel", "parallel", "arbitrary")),
    )(qkv, qkv, qkv, mask_bias)


# --------------------------- pooler + dropout + fc ---------------------------

def _pooler_fc_kernel(x_ref, wp_ref, bp_ref, wf_ref, bf_ref, o_ref):
    # Fused BERT pooler tanh(W_p @ cls + b_p) + dropout(eval: identity) + fc.
    pooled = jnp.tanh(jnp.dot(x_ref[...], wp_ref[...],
                              preferred_element_type=jnp.float32) + bp_ref[...])
    # TODO(synk): nn.Dropout(p=0.3) is identity in eval mode; train-mode
    # stochastic masking (pltpu.prng_*) is not implemented here.
    logits = jnp.dot(pooled.astype(wf_ref.dtype), wf_ref[...],
                     preferred_element_type=jnp.float32) + bf_ref[...]
    o_ref[...] = logits.astype(o_ref.dtype)


def pooler_fc(cls, wp, bp, wf, bfc):
    B, H = cls.shape
    C = wf.shape[1]
    return pl.pallas_call(
        _pooler_fc_kernel,
        out_shape=jax.ShapeDtypeStruct((B, C), jnp.float32),
        grid=(1,),
        in_specs=[
            pl.BlockSpec((B, H), lambda i: (0, 0)),
            pl.BlockSpec((H, H), lambda i: (0, 0)),
            pl.BlockSpec((1, H), lambda i: (0, 0)),
            pl.BlockSpec((H, C), lambda i: (0, 0)),
            pl.BlockSpec((1, C), lambda i: (0, 0)),
        ],
        out_specs=pl.BlockSpec((B, C), lambda i: (0, 0)),
    )(cls, wp, bp.reshape(1, H), wf, bfc.reshape(1, C))


# ------------------------- parameters (deterministic) ------------------------

def init_params(key, vocab_size, max_pos, hidden, n_layers, intermediate,
                n_classes, n_heads):
    scale = 1.0 / math.sqrt(hidden // n_heads)

    def dense(k, fan_in, fan_out):
        # Weights stored bf16 for the MXU; biases kept fp32 for the epilogue.
        w = (0.02 * jax.random.normal(k, (fan_in, fan_out),
                                      jnp.float32)).astype(jnp.bfloat16)
        b = jnp.zeros((fan_out,), jnp.float32)
        return (w, b)

    keys = jax.random.split(key, 4 + n_layers)
    params = {
        "word_emb": 0.02 * jax.random.normal(keys[0], (vocab_size, hidden),
                                             jnp.float32),
        "pos_emb": 0.02 * jax.random.normal(keys[1], (max_pos, hidden),
                                            jnp.float32),
        "type_emb": 0.02 * jax.random.normal(keys[2], (2, hidden),
                                             jnp.float32),
        "emb_ln_g": jnp.ones((hidden,), jnp.float32),
        "emb_ln_b": jnp.zeros((hidden,), jnp.float32),
        "layers": [],
    }
    for l in range(n_layers):
        lk = jax.random.split(keys[3 + l], 6)
        wq, bq = dense(lk[0], hidden, hidden)
        wk, bk = dense(lk[1], hidden, hidden)
        wv, bv = dense(lk[2], hidden, hidden)
        wo, bo = dense(lk[3], hidden, hidden)
        w1, b1 = dense(lk[4], hidden, intermediate)
        w2, b2 = dense(lk[5], intermediate, hidden)
        # Fold the 1/sqrt(Dh) attention scale into the Q projection (weights
        # AND bias) so no per-layer scaling op is needed in the forward pass.
        wq = (wq.astype(jnp.float32) * scale).astype(jnp.bfloat16)
        bq = bq * scale
        params["layers"].append({
            # Fused QKV projection: [H, 3H] weight / [3H] bias.
            "qkv_w": jnp.concatenate([wq, wk, wv], axis=1),
            "qkv_b": jnp.concatenate([bq, bk, bv], axis=0),
            "o_w": wo, "o_b": bo,
            "attn_ln_g": jnp.ones((hidden,), jnp.float32),
            "attn_ln_b": jnp.zeros((hidden,), jnp.float32),
            "ffn1_w": w1, "ffn1_b": b1,
            "ffn2_w": w2, "ffn2_b": b2,
            "out_ln_g": jnp.ones((hidden,), jnp.float32),
            "out_ln_b": jnp.zeros((hidden,), jnp.float32),
        })
    pk = jax.random.split(keys[3 + n_layers], 2)
    params["pooler_w"], params["pooler_b"] = dense(pk[0], hidden, hidden)
    params["fc_w"], params["fc_b"] = dense(pk[1], hidden, n_classes)
    return params


# --------------------------------- forward -----------------------------------

def poem_classifier_forward(params, input_ids, attention_mask, n_heads):
    B, S = input_ids.shape
    H = params["word_emb"].shape[1]
    M = B * S

    # Embeddings: gather is glue (plain JAX); LayerNorm is a Pallas kernel.
    x = (jnp.take(params["word_emb"], input_ids, axis=0)
         + params["pos_emb"][None, :S, :]
         + params["type_emb"][0][None, None, :])
    x2 = layer_norm(x.reshape(M, H), params["emb_ln_g"], params["emb_ln_b"])

    # Additive attention-mask bias, shape (B, 1, S), built once.
    mask_bias = ((1.0 - attention_mask.astype(jnp.float32))
                 * -10000.0).reshape(B, 1, S)

    for layer in params["layers"]:
        # Fused Q/K/V projection -> (B, S, 3H) bf16 (reshape is metadata-only);
        # the attention kernel slices Q/K/V lane ranges directly from it.
        qkv = linear(x2, layer["qkv_w"], layer["qkv_b"]).reshape(B, S, 3 * H)
        ctx = attention(qkv, mask_bias, n_heads)            # (B, S, H) bf16
        # Attention out-proj with fused residual add + LayerNorm epilogue.
        x2 = linear_res_ln(ctx.reshape(M, H), layer["o_w"], layer["o_b"],
                           x2, layer["attn_ln_g"], layer["attn_ln_b"])
        # FFN: GELU fused into the first matmul, residual+LN into the second.
        h1 = linear(x2, layer["ffn1_w"], layer["ffn1_b"], act="gelu")
        x2 = linear_res_ln(h1, layer["ffn2_w"], layer["ffn2_b"],
                           x2, layer["out_ln_g"], layer["out_ln_b"])

    cls = x2.reshape(B, S, H)[:, 0, :]                      # [CLS] token
    logits = pooler_fc(cls, params["pooler_w"], params["pooler_b"],
                       params["fc_w"], params["fc_b"])
    return logits


# ----------------------------------- main ------------------------------------

if __name__ == "__main__":
    B, S = 2, 8
    VOCAB, MAX_POS, HIDDEN = 128, 16, 128
    N_HEADS, N_LAYERS, INTERMEDIATE, N_CLASSES = 2, 2, 256, 3

    key = jax.random.PRNGKey(0)
    pkey, ikey = jax.random.split(key)
    params = init_params(pkey, VOCAB, MAX_POS, HIDDEN, N_LAYERS,
                         INTERMEDIATE, N_CLASSES, N_HEADS)

    input_ids = jax.random.randint(ikey, (B, S), 0, VOCAB, dtype=jnp.int32)
    attention_mask = jnp.array([[1, 1, 1, 1, 1, 1, 1, 1],
                                [1, 1, 1, 1, 1, 0, 0, 0]], dtype=jnp.int32)

    fwd = jax.jit(functools.partial(poem_classifier_forward, n_heads=N_HEADS))
    logits = fwd(params, input_ids, attention_mask)
    jax.block_until_ready(logits)
    assert logits.shape == (B, N_CLASSES)
    assert logits.dtype == jnp.float32
    print("KERNEL_OK")
</pallas_src>

<mosaic_0001>
module attributes {stable_mosaic.version = 11 : i64} {
  func.func @_ln_kernel(%arg0: i32, %arg1: memref<16x128xf32, #tpu.memory_space<vmem>>, %arg2: memref<1x128xf32, #tpu.memory_space<vmem>>, %arg3: memref<1x128xf32, #tpu.memory_space<vmem>>, %arg4: memref<16x128xbf16, #tpu.memory_space<vmem>>) attributes {dimension_semantics = [#tpu.dimension_semantics<parallel>], iteration_bounds = array<i64: 1>, scalar_prefetch = 0 : i64, scratch_operands = 0 : i64, tpu.core_type = #tpu.core_type<tc>, window_params = [{transform_indices = @transform_0, window_bounds = array<i64: 16, 128>}, {pipeline_mode = #tpu.pipeline_mode<synchronous>, transform_indices = @transform_1, window_bounds = array<i64: 1, 128>}, {pipeline_mode = #tpu.pipeline_mode<synchronous>, transform_indices = @transform_2, window_bounds = array<i64: 1, 128>}, {transform_indices = @transform_3, window_bounds = array<i64: 16, 128>}]} {
    %c0 = arith.constant 0 : index
    %c0_0 = arith.constant 0 : index
    %0 = vector.load %arg1[%c0, %c0_0] : memref<16x128xf32, #tpu.memory_space<vmem>>, vector<16x128xf32>
    %cst = arith.constant dense<0.000000e+00> : vector<16xf32>
    %1 = vector.multi_reduction <add>, %0, %cst [1] : vector<16x128xf32> to vector<16xf32>
    %2 = vector.shape_cast %1 : vector<16xf32> to vector<16x1xf32>
    %cst_1 = arith.constant 1.280000e+02 : f32
    %3 = vector.broadcast %cst_1 : f32 to vector<16x1xf32>
    %4 = arith.divf %2, %3 : vector<16x1xf32>
    %5 = vector.broadcast %4 : vector<16x1xf32> to vector<16x128xf32>
    %6 = arith.subf %0, %5 : vector<16x128xf32>
    %7 = arith.mulf %6, %6 : vector<16x128xf32>
    %cst_2 = arith.constant dense<0.000000e+00> : vector<16xf32>
    %8 = vector.multi_reduction <add>, %7, %cst_2 [1] : vector<16x128xf32> to vector<16xf32>
    %9 = vector.shape_cast %8 : vector<16xf32> to vector<16x1xf32>
    %cst_3 = arith.constant 1.280000e+02 : f32
    %10 = vector.broadcast %cst_3 : f32 to vector<16x1xf32>
    %11 = arith.divf %9, %10 : vector<16x1xf32>
    %12 = vector.broadcast %4 : vector<16x1xf32> to vector<16x128xf32>
    %13 = arith.subf %0, %12 : vector<16x128xf32>
    %cst_4 = arith.constant 9.99999996E-13 : f32
    %14 = vector.broadcast %cst_4 : f32 to vector<16x1xf32>
    %15 = arith.addf %11, %14 : vector<16x1xf32>
    %16 = math.rsqrt %15 : vector<16x1xf32>
    %17 = vector.broadcast %16 : vector<16x1xf32> to vector<16x128xf32>
    %18 = arith.mulf %13, %17 : vector<16x128xf32>
    %c0_5 = arith.constant 0 : index
    %c0_6 = arith.constant 0 : index
    %19 = vector.load %arg2[%c0_5, %c0_6] : memref<1x128xf32, #tpu.memory_space<vmem>>, vector<1x128xf32>
    %20 = vector.broadcast %19 : vector<1x128xf32> to vector<16x128xf32>
    %21 = arith.mulf %18, %20 : vector<16x128xf32>
    %c0_7 = arith.constant 0 : index
    %c0_8 = arith.constant 0 : index
    %22 = vector.load %arg3[%c0_7, %c0_8] : memref<1x128xf32, #tpu.memory_space<vmem>>, vector<1x128xf32>
    %23 = vector.broadcast %22 : vector<1x128xf32> to vector<16x128xf32>
    %24 = arith.addf %21, %23 : vector<16x128xf32>
    %25 = arith.truncf %24 : vector<16x128xf32> to vector<16x128xbf16>
    %c0_9 = arith.constant 0 : index
    %c0_10 = arith.constant 0 : index
    %26 = vector.load %arg4[%c0_9, %c0_10] : memref<16x128xbf16, #tpu.memory_space<vmem>>, vector<16x128xbf16>
    tpu.vector_store %arg4[%c0_9, %c0_10], %25 {strides = array<i32>} : memref<16x128xbf16, #tpu.memory_space<vmem>>, vector<16x128xbf16>,
    return
  }
  func.func @transform_0(%arg0: i32) -> (i32, i32) {
    %c0_i32 = arith.constant 0 : i32
    %c0_i32_0 = arith.constant 0 : i32
    return %arg0, %c0_i32 : i32, i32
  }
  func.func @transform_1(%arg0: i32) -> (i32, i32) {
    %c0_i32 = arith.constant 0 : i32
    %c0_i32_0 = arith.constant 0 : i32
    %c0_i32_1 = arith.constant 0 : i32
    return %c0_i32, %c0_i32_0 : i32, i32
  }
  func.func @transform_2(%arg0: i32) -> (i32, i32) {
    %c0_i32 = arith.constant 0 : i32
    %c0_i32_0 = arith.constant 0 : i32
    %c0_i32_1 = arith.constant 0 : i32
    return %c0_i32, %c0_i32_0 : i32, i32
  }
  func.func @transform_3(%arg0: i32) -> (i32, i32) {
    %c0_i32 = arith.constant 0 : i32
    %c0_i32_0 = arith.constant 0 : i32
    return %arg0, %c0_i32 : i32, i32
  }
}

module attributes {stable_mosaic.version = 11 : i64} {
  func.func @_linear_kernel(%arg0: i32, %arg1: i32, %arg2: memref<16x128xbf16, #tpu.memory_space<vmem>>, %arg3: memref<128x128xbf16, #tpu.memory_space<vmem>>, %arg4: memref<1x128xf32, #tpu.memory_space<vmem>>, %arg5: memref<16x128xbf16, #tpu.memory_space<vmem>>) attributes {dimension_semantics = [#tpu.dimension_semantics<parallel>, #tpu.dimension_semantics<parallel>], iteration_bounds = array<i64: 1, 3>, scalar_prefetch = 0 : i64, scratch_operands = 0 : i64, tpu.core_type = #tpu.core_type<tc>, window_params = [{transform_indices = @transform_0, window_bounds = array<i64: 16, 128>}, {transform_indices = @transform_1, window_bounds = array<i64: 128, 128>}, {transform_indices = @transform_2, window_bounds = array<i64: 1, 128>}, {transform_indices = @transform_3, window_bounds = array<i64: 16, 128>}]} {
    %c0 = arith.constant 0 : index
    %c0_0 = arith.constant 0 : index
    %0 = vector.load %arg2[%c0, %c0_0] : memref<16x128xbf16, #tpu.memory_space<vmem>>, vector<16x128xbf16>
    %c0_1 = arith.constant 0 : index
    %c0_2 = arith.constant 0 : index
    %1 = vector.load %arg3[%c0_1, %c0_2] : memref<128x128xbf16, #tpu.memory_space<vmem>>, vector<128x128xbf16>
    %cst = arith.constant dense<0.000000e+00> : vector<16x128xf32>
    %2 = tpu.matmul %0, %1, %cst {dimension_numbers = #tpu.dot_dimension_numbers<[1], [0], [0], [1], [0, 0, 1, 1], [], []>} : vector<16x128xbf16>, vector<128x128xbf16>, vector<16x128xf32> -> vector<16x128xf32>
    %c0_3 = arith.constant 0 : index
    %c0_4 = arith.constant 0 : index
    %3 = vector.load %arg4[%c0_3, %c0_4] : memref<1x128xf32, #tpu.memory_space<vmem>>, vector<1x128xf32>
    %4 = vector.broadcast %3 : vector<1x128xf32> to vector<16x128xf32>
    %5 = arith.addf %2, %4 : vector<16x128xf32>
    %6 = arith.truncf %5 : vector<16x128xf32> to vector<16x128xbf16>
    %c0_5 = arith.constant 0 : index
    %c0_6 = arith.constant 0 : index
    %7 = vector.load %arg5[%c0_5, %c0_6] : memref<16x128xbf16, #tpu.memory_space<vmem>>, vector<16x128xbf16>
    tpu.vector_store %arg5[%c0_5, %c0_6], %6 {strides = array<i32>} : memref<16x128xbf16, #tpu.memory_space<vmem>>, vector<16x128xbf16>,
    return
  }
  func.func @transform_0(%arg0: i32, %arg1: i32) -> (i32, i32) {
    %c0_i32 = arith.constant 0 : i32
    %c0_i32_0 = arith.constant 0 : i32
    return %arg0, %c0_i32 : i32, i32
  }
  func.func @transform_1(%arg0: i32, %arg1: i32) -> (i32, i32) {
    %c0_i32 = arith.constant 0 : i32
    %c0_i32_0 = arith.constant 0 : i32
    return %c0_i32, %arg1 : i32, i32
  }
  func.func @transform_2(%arg0: i32, %arg1: i32) -> (i32, i32) {
    %c0_i32 = arith.constant 0 : i32
    %c0_i32_0 = arith.constant 0 : i32
    return %c0_i32, %arg1 : i32, i32
  }
  func.func @transform_3(%arg0: i32, %arg1: i32) -> (i32, i32) {
    %c0_i32 = arith.constant 0 : i32
    return %arg0, %arg1 : i32, i32
  }
}

module attributes {stable_mosaic.version = 11 : i64} {
  func.func @_attention_kernel(%arg0: i32, %arg1: i32, %arg2: i32, %arg3: memref<1x8x128xbf16, #tpu.memory_space<vmem>>, %arg4: memref<1x8x128xbf16, #tpu.memory_space<vmem>>, %arg5: memref<1x8x128xbf16, #tpu.memory_space<vmem>>, %arg6: memref<1x1x8xf32, #tpu.memory_space<vmem>>, %arg7: memref<1x8x128xbf16, #tpu.memory_space<vmem>>) attributes {dimension_semantics = [#tpu.dimension_semantics<parallel>, #tpu.dimension_semantics<parallel>, #tpu.dimension_semantics<arbitrary>], iteration_bounds = array<i64: 2, 1, 1>, scalar_prefetch = 0 : i64, scratch_operands = 0 : i64, tpu.core_type = #tpu.core_type<tc>, window_params = [{transform_indices = @transform_0, window_bounds = array<i64: 1, 8, 128>}, {transform_indices = @transform_1, window_bounds = array<i64: 1, 8, 128>}, {transform_indices = @transform_2, window_bounds = array<i64: 1, 8, 128>}, {transform_indices = @transform_3, window_bounds = array<i64: 1, 1, 8>}, {transform_indices = @transform_4, window_bounds = array<i64: 1, 8, 128>}]} {
    %c0 = arith.constant 0 : index
    %c0_0 = arith.constant 0 : index
    %c0_1 = arith.constant 0 : index
    %0 = vector.load %arg6[%c0, %c0_0, %c0_1] : memref<1x1x8xf32, #tpu.memory_space<vmem>>, vector<1x1x8xf32>
    %1 = vector.shape_cast %0 : vector<1x1x8xf32> to vector<1x8xf32>
    %c0_2 = arith.constant 0 : index
    %c0_3 = arith.constant 0 : index
    %c0_4 = arith.constant 0 : index
    %2 = vector.load %arg3[%c0_2, %c0_3, %c0_4] : memref<1x8x128xbf16, #tpu.memory_space<vmem>>, vector<1x8x64xbf16>
    %3 = vector.shape_cast %2 : vector<1x8x64xbf16> to vector<8x64xbf16>
    %c0_5 = arith.constant 0 : index
    %c0_6 = arith.constant 0 : index
    %c0_7 = arith.constant 0 : index
    %4 = vector.load %arg4[%c0_5, %c0_6, %c0_7] : memref<1x8x128xbf16, #tpu.memory_space<vmem>>, vector<1x8x64xbf16>
    %5 = vector.shape_cast %4 : vector<1x8x64xbf16> to vector<8x64xbf16>
    %cst = arith.constant dense<0.000000e+00> : vector<8x8xf32>
    %6 = tpu.matmul %3, %5, %cst {dimension_numbers = #tpu.dot_dimension_numbers<[1], [1], [0], [0], [0, 0, 1, 0], [], []>} : vector<8x64xbf16>, vector<8x64xbf16>, vector<8x8xf32> -> vector<8x8xf32>
    %c0_8 = arith.constant 0 : index
    %c0_9 = arith.constant 0 : index
    %c64 = arith.constant 64 : index
    %7 = vector.load %arg3[%c0_8, %c0_9, %c64] : memref<1x8x128xbf16, #tpu.memory_space<vmem>>, vector<1x8x64xbf16>
    %8 = vector.shape_cast %7 : vector<1x8x64xbf16> to vector<8x64xbf16>
    %c0_10 = arith.constant 0 : index
    %c0_11 = arith.constant 0 : index
    %c64_12 = arith.constant 64 : index
    %9 = vector.load %arg4[%c0_10, %c0_11, %c64_12] : memref<1x8x128xbf16, #tpu.memory_space<vmem>>, vector<1x8x64xbf16>
    %10 = vector.shape_cast %9 : vector<1x8x64xbf16> to vector<8x64xbf16>
    %cst_13 = arith.constant dense<0.000000e+00> : vector<8x8xf32>
    %11 = tpu.matmul %8, %10, %cst_13 {dimension_numbers = #tpu.dot_dimension_numbers<[1], [1], [0], [0], [0, 0, 1, 0], [], []>} : vector<8x64xbf16>, vector<8x64xbf16>, vector<8x8xf32> -> vector<8x8xf32>
    %12 = vector.broadcast %1 : vector<1x8xf32> to vector<8x8xf32>
    %13 = arith.addf %6, %12 : vector<8x8xf32>
    %cst_14 = arith.constant dense<0xFF800000> : vector<8xf32>
    %14 = vector.multi_reduction <maximumf>, %13, %cst_14 [1] : vector<8x8xf32> to vector<8xf32>
    %15 = vector.shape_cast %14 : vector<8xf32> to vector<8x1xf32>
    %16 = vector.broadcast %15 : vector<8x1xf32> to vector<8x8xf32>
    %17 = arith.subf %13, %16 : vector<8x8xf32>
    %18 = math.exp %17 : vector<8x8xf32>
    %cst_15 = arith.constant dense<0.000000e+00> : vector<8xf32>
    %19 = vector.multi_reduction <add>, %18, %cst_15 [1] : vector<8x8xf32> to vector<8xf32>
    %20 = vector.shape_cast %19 : vector<8xf32> to vector<8x1xf32>
    %21 = tpu.reciprocal %20 {approx = true} : vector<8x1xf32> -> vector<8x1xf32>
    %22 = vector.broadcast %21 : vector<8x1xf32> to vector<8x8xf32>
    %23 = arith.mulf %18, %22 : vector<8x8xf32>
    %24 = vector.broadcast %1 : vector<1x8xf32> to vector<8x8xf32>
    %25 = arith.addf %11, %24 : vector<8x8xf32>
    %cst_16 = arith.constant dense<0xFF800000> : vector<8xf32>
    %26 = vector.multi_reduction <maximumf>, %25, %cst_16 [1] : vector<8x8xf32> to vector<8xf32>
    %27 = vector.shape_cast %26 : vector<8xf32> to vector<8x1xf32>
    %28 = vector.broadcast %27 : vector<8x1xf32> to vector<8x8xf32>
    %29 = arith.subf %25, %28 : vector<8x8xf32>
    %30 = math.exp %29 : vector<8x8xf32>
    %cst_17 = arith.constant dense<0.000000e+00> : vector<8xf32>
    %31 = vector.multi_reduction <add>, %30, %cst_17 [1] : vector<8x8xf32> to vector<8xf32>
    %32 = vector.shape_cast %31 : vector<8xf32> to vector<8x1xf32>
    %33 = tpu.reciprocal %32 {approx = true} : vector<8x1xf32> -> vector<8x1xf32>
    %34 = vector.broadcast %33 : vector<8x1xf32> to vector<8x8xf32>
    %35 = arith.mulf %30, %34 : vector<8x8xf32>
    %36 = arith.truncf %23 : vector<8x8xf32> to vector<8x8xbf16>
    %c0_18 = arith.constant 0 : index
    %c0_19 = arith.constant 0 : index
    %c0_20 = arith.constant 0 : index
    %37 = vector.load %arg5[%c0_18, %c0_19, %c0_20] : memref<1x8x128xbf16, #tpu.memory_space<vmem>>, vector<1x8x64xbf16>
    %38 = vector.shape_cast %37 : vector<1x8x64xbf16> to vector<8x64xbf16>
    %cst_21 = arith.constant dense<0.000000e+00> : vector<8x64xf32>
    %39 = tpu.matmul %36, %38, %cst_21 {dimension_numbers = #tpu.dot_dimension_numbers<[1], [0], [0], [1], [0, 0, 1, 1], [], []>} : vector<8x8xbf16>, vector<8x64xbf16>, vector<8x64xf32> -> vector<8x64xf32>
    %40 = arith.truncf %35 : vector<8x8xf32> to vector<8x8xbf16>
    %c0_22 = arith.constant 0 : index
    %c0_23 = arith.constant 0 : index
    %c64_24 = arith.constant 64 : index
    %41 = vector.load %arg5[%c0_22, %c0_23, %c64_24] : memref<1x8x128xbf16, #tpu.memory_space<vmem>>, vector<1x8x64xbf16>
    %42 = vector.shape_cast %41 : vector<1x8x64xbf16> to vector<8x64xbf16>
    %cst_25 = arith.constant dense<0.000000e+00> : vector<8x64xf32>
    %43 = tpu.matmul %40, %42, %cst_25 {dimension_numbers = #tpu.dot_dimension_numbers<[1], [0], [0], [1], [0, 0, 1, 1], [], []>} : vector<8x8xbf16>, vector<8x64xbf16>, vector<8x64xf32> -> vector<8x64xf32>
    %44 = tpu.concatenate %39, %43 in 1 : vector<8x64xf32>, vector<8x64xf32> -> vector<8x128xf32>
    %45 = arith.truncf %44 : vector<8x128xf32> to vector<8x128xbf16>
    %c0_26 = arith.constant 0 : index
    %c0_27 = arith.constant 0 : index
    %c0_28 = arith.constant 0 : index
    %46 = vector.load %arg7[%c0_26, %c0_27, %c0_28] : memref<1x8x128xbf16, #tpu.memory_space<vmem>>, vector<1x8x128xbf16>
    %47 = vector.shape_cast %46 : vector<1x8x128xbf16> to vector<8x128xbf16>
    %48 = vector.shape_cast %45 : vector<8x128xbf16> to vector<1x8x128xbf16>
    tpu.vector_store %arg7[%c0_26, %c0_27, %c0_28], %48 {strides = array<i32>} : memref<1x8x128xbf16, #tpu.memory_space<vmem>>, vector<1x8x128xbf16>,
    return
  }
  func.func @transform_0(%arg0: i32, %arg1: i32, %arg2: i32) -> (i32, i32, i32) {
    %c0_i32 = arith.constant 0 : i32
    return %arg0, %arg2, %arg1 : i32, i32, i32
  }
  func.func @transform_1(%arg0: i32, %arg1: i32, %arg2: i32) -> (i32, i32, i32) {
    %c1_i32 = arith.constant 1 : i32
    %0 = arith.addi %c1_i32, %arg1 : i32
    %c0_i32 = arith.constant 0 : i32
    %c0_i32_0 = arith.constant 0 : i32
    return %arg0, %c0_i32, %0 : i32, i32, i32
  }
  func.func @transform_2(%arg0: i32, %arg1: i32, %arg2: i32) -> (i32, i32, i32) {
    %c2_i32 = arith.constant 2 : i32
    %0 = arith.addi %c2_i32, %arg1 : i32
    %c0_i32 = arith.constant 0 : i32
    %c0_i32_0 = arith.constant 0 : i32
    return %arg0, %c0_i32, %0 : i32, i32, i32
  }
  func.func @transform_3(%arg0: i32, %arg1: i32, %arg2: i32) -> (i32, i32, i32) {
    %c0_i32 = arith.constant 0 : i32
    %c0_i32_0 = arith.constant 0 : i32
    %c0_i32_1 = arith.constant 0 : i32
    return %arg0, %c0_i32, %c0_i32_0 : i32, i32, i32
  }
  func.func @transform_4(%arg0: i32, %arg1: i32, %arg2: i32) -> (i32, i32, i32) {
    %c0_i32 = arith.constant 0 : i32
    return %arg0, %arg2, %arg1 : i32, i32, i32
  }
}

module attributes {stable_mosaic.version = 11 : i64} {
  func.func @_linear_res_ln_kernel(%arg0: i32, %arg1: memref<16x128xbf16, #tpu.memory_space<vmem>>, %arg2: memref<128x128xbf16, #tpu.memory_space<vmem>>, %arg3: memref<1x128xf32, #tpu.memory_space<vmem>>, %arg4: memref<16x128xbf16, #tpu.memory_space<vmem>>, %arg5: memref<1x128xf32, #tpu.memory_space<vmem>>, %arg6: memref<1x128xf32, #tpu.memory_space<vmem>>, %arg7: memref<16x128xbf16, #tpu.memory_space<vmem>>) attributes {dimension_semantics = [#tpu.dimension_semantics<parallel>], iteration_bounds = array<i64: 1>, scalar_prefetch = 0 : i64, scratch_operands = 0 : i64, tpu.core_type = #tpu.core_type<tc>, window_params = [{transform_indices = @transform_0, window_bounds = array<i64: 16, 128>}, {pipeline_mode = #tpu.pipeline_mode<synchronous>, transform_indices = @transform_1, window_bounds = array<i64: 128, 128>}, {pipeline_mode = #tpu.pipeline_mode<synchronous>, transform_indices = @transform_2, window_bounds = array<i64: 1, 128>}, {transform_indices = @transform_3, window_bounds = array<i64: 16, 128>}, {pipeline_mode = #tpu.pipeline_mode<synchronous>, transform_indices = @transform_4, window_bounds = array<i64: 1, 128>}, {pipeline_mode = #tpu.pipeline_mode<synchronous>, transform_indices = @transform_5, window_bounds = array<i64: 1, 128>}, {transform_indices = @transform_6, window_bounds = array<i64: 16, 128>}]} {
    %c0 = arith.constant 0 : index
    %c0_0 = arith.constant 0 : index
    %0 = vector.load %arg1[%c0, %c0_0] : memref<16x128xbf16, #tpu.memory_space<vmem>>, vector<16x128xbf16>
    %c0_1 = arith.constant 0 : index
    %c0_2 = arith.constant 0 : index
    %1 = vector.load %arg2[%c0_1, %c0_2] : memref<128x128xbf16, #tpu.memory_space<vmem>>, vector<128x128xbf16>
    %cst = arith.constant dense<0.000000e+00> : vector<16x128xf32>
    %2 = tpu.matmul %0, %1, %cst {dimension_numbers = #tpu.dot_dimension_numbers<[1], [0], [0], [1], [0, 0, 1, 1], [], []>} : vector<16x128xbf16>, vector<128x128xbf16>, vector<16x128xf32> -> vector<16x128xf32>
    %c0_3 = arith.constant 0 : index
    %c0_4 = arith.constant 0 : index
    %3 = vector.load %arg3[%c0_3, %c0_4] : memref<1x128xf32, #tpu.memory_space<vmem>>, vector<1x128xf32>
    %4 = vector.broadcast %3 : vector<1x128xf32> to vector<16x128xf32>
    %5 = arith.addf %2, %4 : vector<16x128xf32>
    %c0_5 = arith.constant 0 : index
    %c0_6 = arith.constant 0 : index
    %6 = vector.load %arg4[%c0_5, %c0_6] : memref<16x128xbf16, #tpu.memory_space<vmem>>, vector<16x128xbf16>
    %7 = arith.extf %6 : vector<16x128xbf16> to vector<16x128xf32>
    %8 = arith.addf %5, %7 : vector<16x128xf32>
    %cst_7 = arith.constant dense<0.000000e+00> : vector<16xf32>
    %9 = vector.multi_reduction <add>, %8, %cst_7 [1] : vector<16x128xf32> to vector<16xf32>
    %10 = vector.shape_cast %9 : vector<16xf32> to vector<16x1xf32>
    %cst_8 = arith.constant 1.280000e+02 : f32
    %11 = vector.broadcast %cst_8 : f32 to vector<16x1xf32>
    %12 = arith.divf %10, %11 : vector<16x1xf32>
    %13 = vector.broadcast %12 : vector<16x1xf32> to vector<16x128xf32>
    %14 = arith.subf %8, %13 : vector<16x128xf32>
    %15 = arith.mulf %14, %14 : vector<16x128xf32>
    %cst_9 = arith.constant dense<0.000000e+00> : vector<16xf32>
    %16 = vector.multi_reduction <add>, %15, %cst_9 [1] : vector<16x128xf32> to vector<16xf32>
    %17 = vector.shape_cast %16 : vector<16xf32> to vector<16x1xf32>
    %cst_10 = arith.constant 1.280000e+02 : f32
    %18 = vector.broadcast %cst_10 : f32 to vector<16x1xf32>
    %19 = arith.divf %17, %18 : vector<16x1xf32>
    %20 = vector.broadcast %12 : vector<16x1xf32> to vector<16x128xf32>
    %21 = arith.subf %8, %20 : vector<16x128xf32>
    %cst_11 = arith.constant 9.99999996E-13 : f32
    %22 = vector.broadcast %cst_11 : f32 to vector<16x1xf32>
    %23 = arith.addf %19, %22 : vector<16x1xf32>
    %24 = math.rsqrt %23 : vector<16x1xf32>
    %25 = vector.broadcast %24 : vector<16x1xf32> to vector<16x128xf32>
    %26 = arith.mulf %21, %25 : vector<16x128xf32>
    %c0_12 = arith.constant 0 : index
    %c0_13 = arith.constant 0 : index
    %27 = vector.load %arg5[%c0_12, %c0_13] : memref<1x128xf32, #tpu.memory_space<vmem>>, vector<1x128xf32>
    %28 = vector.broadcast %27 : vector<1x128xf32> to vector<16x128xf32>
    %29 = arith.mulf %26, %28 : vector<16x128xf32>
    %c0_14 = arith.constant 0 : index
    %c0_15 = arith.constant 0 : index
    %30 = vector.load %arg6[%c0_14, %c0_15] : memref<1x128xf32, #tpu.memory_space<vmem>>, vector<1x128xf32>
    %31 = vector.broadcast %30 : vector<1x128xf32> to vector<16x128xf32>
    %32 = arith.addf %29, %31 : vector<16x128xf32>
    %33 = arith.truncf %32 : vector<16x128xf32> to vector<16x128xbf16>
    %c0_16 = arith.constant 0 : index
    %c0_17 = arith.constant 0 : index
    %34 = vector.load %arg7[%c0_16, %c0_17] : memref<16x128xbf16, #tpu.memory_space<vmem>>, vector<16x128xbf16>
    tpu.vector_store %arg7[%c0_16, %c0_17], %33 {strides = array<i32>} : memref<16x128xbf16, #tpu.memory_space<vmem>>, vector<16x128xbf16>,
    return
  }
  func.func @transform_0(%arg0: i32) -> (i32, i32) {
    %c0_i32 = arith.constant 0 : i32
    %c0_i32_0 = arith.constant 0 : i32
    return %arg0, %c0_i32 : i32, i32
  }
  func.func @transform_1(%arg0: i32) -> (i32, i32) {
    %c0_i32 = arith.constant 0 : i32
    %c0_i32_0 = arith.constant 0 : i32
    %c0_i32_1 = arith.constant 0 : i32
    return %c0_i32, %c0_i32_0 : i32, i32
  }
  func.func @transform_2(%arg0: i32) -> (i32, i32) {
    %c0_i32 = arith.constant 0 : i32
    %c0_i32_0 = arith.constant 0 : i32
    %c0_i32_1 = arith.constant 0 : i32
    return %c0_i32, %c0_i32_0 : i32, i32
  }
  func.func @transform_3(%arg0: i32) -> (i32, i32) {
    %c0_i32 = arith.constant 0 : i32
    %c0_i32_0 = arith.constant 0 : i32
    return %arg0, %c0_i32 : i32, i32
  }
  func.func @transform_4(%arg0: i32) -> (i32, i32) {
    %c0_i32 = arith.constant 0 : i32
    %c0_i32_0 = arith.constant 0 : i32
    %c0_i32_1 = arith.constant 0 : i32
    return %c0_i32, %c0_i32_0 : i32, i32
  }
  func.func @transform_5(%arg0: i32) -> (i32, i32) {
    %c0_i32 = arith.constant 0 : i32
    %c0_i32_0 = arith.constant 0 : i32
    %c0_i32_1 = arith.constant 0 : i32
    return %c0_i32, %c0_i32_0 : i32, i32
  }
  func.func @transform_6(%arg0: i32) -> (i32, i32) {
    %c0_i32 = arith.constant 0 : i32
    %c0_i32_0 = arith.constant 0 : i32
    return %arg0, %c0_i32 : i32, i32
  }
}

module attributes {stable_mosaic.version = 11 : i64} {
  func.func @_linear_kernel(%arg0: i32, %arg1: i32, %arg2: memref<16x128xbf16, #tpu.memory_space<vmem>>, %arg3: memref<128x256xbf16, #tpu.memory_space<vmem>>, %arg4: memref<1x256xf32, #tpu.memory_space<vmem>>, %arg5: memref<16x256xbf16, #tpu.memory_space<vmem>>) attributes {dimension_semantics = [#tpu.dimension_semantics<parallel>, #tpu.dimension_semantics<parallel>], iteration_bounds = array<i64: 1, 1>, scalar_prefetch = 0 : i64, scratch_operands = 0 : i64, tpu.core_type = #tpu.core_type<tc>, window_params = [{transform_indices = @transform_0, window_bounds = array<i64: 16, 128>}, {transform_indices = @transform_1, window_bounds = array<i64: 128, 256>}, {transform_indices = @transform_2, window_bounds = array<i64: 1, 256>}, {transform_indices = @transform_3, window_bounds = array<i64: 16, 256>}]} {
    %c0 = arith.constant 0 : index
    %c0_0 = arith.constant 0 : index
    %0 = vector.load %arg2[%c0, %c0_0] : memref<16x128xbf16, #tpu.memory_space<vmem>>, vector<16x128xbf16>
    %c0_1 = arith.constant 0 : index
    %c0_2 = arith.constant 0 : index
    %1 = vector.load %arg3[%c0_1, %c0_2] : memref<128x256xbf16, #tpu.memory_space<vmem>>, vector<128x256xbf16>
    %cst = arith.constant dense<0.000000e+00> : vector<16x256xf32>
    %2 = tpu.matmul %0, %1, %cst {dimension_numbers = #tpu.dot_dimension_numbers<[1], [0], [0], [1], [0, 0, 1, 1], [], []>} : vector<16x128xbf16>, vector<128x256xbf16>, vector<16x256xf32> -> vector<16x256xf32>
    %c0_3 = arith.constant 0 : index
    %c0_4 = arith.constant 0 : index
    %3 = vector.load %arg4[%c0_3, %c0_4] : memref<1x256xf32, #tpu.memory_space<vmem>>, vector<1x256xf32>
    %4 = vector.broadcast %3 : vector<1x256xf32> to vector<16x256xf32>
    %5 = arith.addf %2, %4 : vector<16x256xf32>
    %cst_5 = arith.constant 5.000000e-01 : f32
    %6 = vector.broadcast %cst_5 : f32 to vector<16x256xf32>
    %7 = arith.mulf %6, %5 : vector<16x256xf32>
    %cst_6 = arith.constant 0.707106769 : f32
    %8 = vector.broadcast %cst_6 : f32 to vector<16x256xf32>
    %9 = arith.mulf %5, %8 : vector<16x256xf32>
    %10 = math.erf %9 : vector<16x256xf32>
    %cst_7 = arith.constant 1.000000e+00 : f32
    %11 = vector.broadcast %cst_7 : f32 to vector<16x256xf32>
    %12 = arith.addf %11, %10 : vector<16x256xf32>
    %13 = arith.mulf %7, %12 : vector<16x256xf32>
    %14 = arith.truncf %13 : vector<16x256xf32> to vector<16x256xbf16>
    %c0_8 = arith.constant 0 : index
    %c0_9 = arith.constant 0 : index
    %15 = vector.load %arg5[%c0_8, %c0_9] : memref<16x256xbf16, #tpu.memory_space<vmem>>, vector<16x256xbf16>
    tpu.vector_store %arg5[%c0_8, %c0_9], %14 {strides = array<i32>} : memref<16x256xbf16, #tpu.memory_space<vmem>>, vector<16x256xbf16>,
    return
  }
  func.func @transform_0(%arg0: i32, %arg1: i32) -> (i32, i32) {
    %c0_i32 = arith.constant 0 : i32
    %c0_i32_0 = arith.constant 0 : i32
    return %arg0, %c0_i32 : i32, i32
  }
  func.func @transform_1(%arg0: i32, %arg1: i32) -> (i32, i32) {
    %c0_i32 = arith.constant 0 : i32
    %c0_i32_0 = arith.constant 0 : i32
    return %c0_i32, %arg1 : i32, i32
  }
  func.func @transform_2(%arg0: i32, %arg1: i32) -> (i32, i32) {
    %c0_i32 = arith.constant 0 : i32
    %c0_i32_0 = arith.constant 0 : i32
    return %c0_i32, %arg1 : i32, i32
  }
  func.func @transform_3(%arg0: i32, %arg1: i32) -> (i32, i32) {
    %c0_i32 = arith.constant 0 : i32
    return %arg0, %arg1 : i32, i32
  }
}

module attributes {stable_mosaic.version = 11 : i64} {
  func.func @_linear_res_ln_kernel(%arg0: i32, %arg1: memref<16x256xbf16, #tpu.memory_space<vmem>>, %arg2: memref<256x128xbf16, #tpu.memory_space<vmem>>, %arg3: memref<1x128xf32, #tpu.memory_space<vmem>>, %arg4: memref<16x128xbf16, #tpu.memory_space<vmem>>, %arg5: memref<1x128xf32, #tpu.memory_space<vmem>>, %arg6: memref<1x128xf32, #tpu.memory_space<vmem>>, %arg7: memref<16x128xbf16, #tpu.memory_space<vmem>>) attributes {dimension_semantics = [#tpu.dimension_semantics<parallel>], iteration_bounds = array<i64: 1>, scalar_prefetch = 0 : i64, scratch_operands = 0 : i64, tpu.core_type = #tpu.core_type<tc>, window_params = [{transform_indices = @transform_0, window_bounds = array<i64: 16, 256>}, {pipeline_mode = #tpu.pipeline_mode<synchronous>, transform_indices = @transform_1, window_bounds = array<i64: 256, 128>}, {pipeline_mode = #tpu.pipeline_mode<synchronous>, transform_indices = @transform_2, window_bounds = array<i64: 1, 128>}, {transform_indices = @transform_3, window_bounds = array<i64: 16, 128>}, {pipeline_mode = #tpu.pipeline_mode<synchronous>, transform_indices = @transform_4, window_bounds = array<i64: 1, 128>}, {pipeline_mode = #tpu.pipeline_mode<synchronous>, transform_indices = @transform_5, window_bounds = array<i64: 1, 128>}, {transform_indices = @transform_6, window_bounds = array<i64: 16, 128>}]} {
    %c0 = arith.constant 0 : index
    %c0_0 = arith.constant 0 : index
    %0 = vector.load %arg1[%c0, %c0_0] : memref<16x256xbf16, #tpu.memory_space<vmem>>, vector<16x256xbf16>
    %c0_1 = arith.constant 0 : index
    %c0_2 = arith.constant 0 : index
    %1 = vector.load %arg2[%c0_1, %c0_2] : memref<256x128xbf16, #tpu.memory_space<vmem>>, vector<256x128xbf16>
    %cst = arith.constant dense<0.000000e+00> : vector<16x128xf32>
    %2 = tpu.matmul %0, %1, %cst {dimension_numbers = #tpu.dot_dimension_numbers<[1], [0], [0], [1], [0, 0, 1, 1], [], []>} : vector<16x256xbf16>, vector<256x128xbf16>, vector<16x128xf32> -> vector<16x128xf32>
    %c0_3 = arith.constant 0 : index
    %c0_4 = arith.constant 0 : index
    %3 = vector.load %arg3[%c0_3, %c0_4] : memref<1x128xf32, #tpu.memory_space<vmem>>, vector<1x128xf32>
    %4 = vector.broadcast %3 : vector<1x128xf32> to vector<16x128xf32>
    %5 = arith.addf %2, %4 : vector<16x128xf32>
    %c0_5 = arith.constant 0 : index
    %c0_6 = arith.constant 0 : index
    %6 = vector.load %arg4[%c0_5, %c0_6] : memref<16x128xbf16, #tpu.memory_space<vmem>>, vector<16x128xbf16>
    %7 = arith.extf %6 : vector<16x128xbf16> to vector<16x128xf32>
    %8 = arith.addf %5, %7 : vector<16x128xf32>
    %cst_7 = arith.constant dense<0.000000e+00> : vector<16xf32>
    %9 = vector.multi_reduction <add>, %8, %cst_7 [1] : vector<16x128xf32> to vector<16xf32>
    %10 = vector.shape_cast %9 : vector<16xf32> to vector<16x1xf32>
    %cst_8 = arith.constant 1.280000e+02 : f32
    %11 = vector.broadcast %cst_8 : f32 to vector<16x1xf32>
    %12 = arith.divf %10, %11 : vector<16x1xf32>
    %13 = vector.broadcast %12 : vector<16x1xf32> to vector<16x128xf32>
    %14 = arith.subf %8, %13 : vector<16x128xf32>
    %15 = arith.mulf %14, %14 : vector<16x128xf32>
    %cst_9 = arith.constant dense<0.000000e+00> : vector<16xf32>
    %16 = vector.multi_reduction <add>, %15, %cst_9 [1] : vector<16x128xf32> to vector<16xf32>
    %17 = vector.shape_cast %16 : vector<16xf32> to vector<16x1xf32>
    %cst_10 = arith.constant 1.280000e+02 : f32
    %18 = vector.broadcast %cst_10 : f32 to vector<16x1xf32>
    %19 = arith.divf %17, %18 : vector<16x1xf32>
    %20 = vector.broadcast %12 : vector<16x1xf32> to vector<16x128xf32>
    %21 = arith.subf %8, %20 : vector<16x128xf32>
    %cst_11 = arith.constant 9.99999996E-13 : f32
    %22 = vector.broadcast %cst_11 : f32 to vector<16x1xf32>
    %23 = arith.addf %19, %22 : vector<16x1xf32>
    %24 = math.rsqrt %23 : vector<16x1xf32>
    %25 = vector.broadcast %24 : vector<16x1xf32> to vector<16x128xf32>
    %26 = arith.mulf %21, %25 : vector<16x128xf32>
    %c0_12 = arith.constant 0 : index
    %c0_13 = arith.constant 0 : index
    %27 = vector.load %arg5[%c0_12, %c0_13] : memref<1x128xf32, #tpu.memory_space<vmem>>, vector<1x128xf32>
    %28 = vector.broadcast %27 : vector<1x128xf32> to vector<16x128xf32>
    %29 = arith.mulf %26, %28 : vector<16x128xf32>
    %c0_14 = arith.constant 0 : index
    %c0_15 = arith.constant 0 : index
    %30 = vector.load %arg6[%c0_14, %c0_15] : memref<1x128xf32, #tpu.memory_space<vmem>>, vector<1x128xf32>
    %31 = vector.broadcast %30 : vector<1x128xf32> to vector<16x128xf32>
    %32 = arith.addf %29, %31 : vector<16x128xf32>
    %33 = arith.truncf %32 : vector<16x128xf32> to vector<16x128xbf16>
    %c0_16 = arith.constant 0 : index
    %c0_17 = arith.constant 0 : index
    %34 = vector.load %arg7[%c0_16, %c0_17] : memref<16x128xbf16, #tpu.memory_space<vmem>>, vector<16x128xbf16>
    tpu.vector_store %arg7[%c0_16, %c0_17], %33 {strides = array<i32>} : memref<16x128xbf16, #tpu.memory_space<vmem>>, vector<16x128xbf16>,
    return
  }
  func.func @transform_0(%arg0: i32) -> (i32, i32) {
    %c0_i32 = arith.constant 0 : i32
    %c0_i32_0 = arith.constant 0 : i32
    return %arg0, %c0_i32 : i32, i32
  }
  func.func @transform_1(%arg0: i32) -> (i32, i32) {
    %c0_i32 = arith.constant 0 : i32
    %c0_i32_0 = arith.constant 0 : i32
    %c0_i32_1 = arith.constant 0 : i32
    return %c0_i32, %c0_i32_0 : i32, i32
  }
  func.func @transform_2(%arg0: i32) -> (i32, i32) {
    %c0_i32 = arith.constant 0 : i32
    %c0_i32_0 = arith.constant 0 : i32
    %c0_i32_1 = arith.constant 0 : i32
    return %c0_i32, %c0_i32_0 : i32, i32
  }
  func.func @transform_3(%arg0: i32) -> (i32, i32) {
    %c0_i32 = arith.constant 0 : i32
    %c0_i32_0 = arith.constant 0 : i32
    return %arg0, %c0_i32 : i32, i32
  }
  func.func @transform_4(%arg0: i32) -> (i32, i32) {
    %c0_i32 = arith.constant 0 : i32
    %c0_i32_0 = arith.constant 0 : i32
    %c0_i32_1 = arith.constant 0 : i32
    return %c0_i32, %c0_i32_0 : i32, i32
  }
  func.func @transform_5(%arg0: i32) -> (i32, i32) {
    %c0_i32 = arith.constant 0 : i32
    %c0_i32_0 = arith.constant 0 : i32
    %c0_i32_1 = arith.constant 0 : i32
    return %c0_i32, %c0_i32_0 : i32, i32
  }
  func.func @transform_6(%arg0: i32) -> (i32, i32) {
    %c0_i32 = arith.constant 0 : i32
    %c0_i32_0 = arith.constant 0 : i32
    return %arg0, %c0_i32 : i32, i32
  }
}

module attributes {stable_mosaic.version = 11 : i64} {
  func.func @_pooler_fc_kernel(%arg0: i32, %arg1: memref<2x128xbf16, #tpu.memory_space<vmem>>, %arg2: memref<128x128xbf16, #tpu.memory_space<vmem>>, %arg3: memref<1x128xf32, #tpu.memory_space<vmem>>, %arg4: memref<128x3xbf16, #tpu.memory_space<vmem>>, %arg5: memref<1x3xf32, #tpu.memory_space<vmem>>, %arg6: memref<2x3xf32, #tpu.memory_space<vmem>>) attributes {dimension_semantics = [#tpu.dimension_semantics<arbitrary>], iteration_bounds = array<i64: 1>, scalar_prefetch = 0 : i64, scratch_operands = 0 : i64, tpu.core_type = #tpu.core_type<tc>, window_params = [{pipeline_mode = #tpu.pipeline_mode<synchronous>, transform_indices = @transform_0, window_bounds = array<i64: 2, 128>}, {pipeline_mode = #tpu.pipeline_mode<synchronous>, transform_indices = @transform_1, window_bounds = array<i64: 128, 128>}, {pipeline_mode = #tpu.pipeline_mode<synchronous>, transform_indices = @transform_2, window_bounds = array<i64: 1, 128>}, {pipeline_mode = #tpu.pipeline_mode<synchronous>, transform_indices = @transform_3, window_bounds = array<i64: 128, 3>}, {pipeline_mode = #tpu.pipeline_mode<synchronous>, transform_indices = @transform_4, window_bounds = array<i64: 1, 3>}, {pipeline_mode = #tpu.pipeline_mode<synchronous>, transform_indices = @transform_5, window_bounds = array<i64: 2, 3>}]} {
    %c0 = arith.constant 0 : index
    %c0_0 = arith.constant 0 : index
    %0 = vector.load %arg1[%c0, %c0_0] : memref<2x128xbf16, #tpu.memory_space<vmem>>, vector<2x128xbf16>
    %c0_1 = arith.constant 0 : index
    %c0_2 = arith.constant 0 : index
    %1 = vector.load %arg2[%c0_1, %c0_2] : memref<128x128xbf16, #tpu.memory_space<vmem>>, vector<128x128xbf16>
    %cst = arith.constant dense<0.000000e+00> : vector<2x128xf32>
    %2 = tpu.matmul %0, %1, %cst {dimension_numbers = #tpu.dot_dimension_numbers<[1], [0], [0], [1], [0, 0, 1, 1], [], []>} : vector<2x128xbf16>, vector<128x128xbf16>, vector<2x128xf32> -> vector<2x128xf32>
    %c0_3 = arith.constant 0 : index
    %c0_4 = arith.constant 0 : index
    %3 = vector.load %arg3[%c0_3, %c0_4] : memref<1x128xf32, #tpu.memory_space<vmem>>, vector<1x128xf32>
    %4 = vector.broadcast %3 : vector<1x128xf32> to vector<2x128xf32>
    %5 = arith.addf %2, %4 : vector<2x128xf32>
    %6 = math.tanh %5 : vector<2x128xf32>
    %7 = arith.truncf %6 : vector<2x128xf32> to vector<2x128xbf16>
    %c0_5 = arith.constant 0 : index
    %c0_6 = arith.constant 0 : index
    %8 = vector.load %arg4[%c0_5, %c0_6] : memref<128x3xbf16, #tpu.memory_space<vmem>>, vector<128x3xbf16>
    %cst_7 = arith.constant dense<0.000000e+00> : vector<2x3xf32>
    %9 = tpu.matmul %7, %8, %cst_7 {dimension_numbers = #tpu.dot_dimension_numbers<[1], [0], [0], [1], [0, 0, 1, 1], [], []>} : vector<2x128xbf16>, vector<128x3xbf16>, vector<2x3xf32> -> vector<2x3xf32>
    %c0_8 = arith.constant 0 : index
    %c0_9 = arith.constant 0 : index
    %10 = vector.load %arg5[%c0_8, %c0_9] : memref<1x3xf32, #tpu.memory_space<vmem>>, vector<1x3xf32>
    %11 = vector.broadcast %10 : vector<1x3xf32> to vector<2x3xf32>
    %12 = arith.addf %9, %11 : vector<2x3xf32>
    %c0_10 = arith.constant 0 : index
    %c0_11 = arith.constant 0 : index
    %13 = vector.load %arg6[%c0_10, %c0_11] : memref<2x3xf32, #tpu.memory_space<vmem>>, vector<2x3xf32>
    tpu.vector_store %arg6[%c0_10, %c0_11], %12 {strides = array<i32>} : memref<2x3xf32, #tpu.memory_space<vmem>>, vector<2x3xf32>,
    return
  }
  func.func @transform_0(%arg0: i32) -> (i32, i32) {
    %c0_i32 = arith.constant 0 : i32
    %c0_i32_0 = arith.constant 0 : i32
    %c0_i32_1 = arith.constant 0 : i32
    return %c0_i32, %c0_i32_0 : i32, i32
  }
  func.func @transform_1(%arg0: i32) -> (i32, i32) {
    %c0_i32 = arith.constant 0 : i32
    %c0_i32_0 = arith.constant 0 : i32
    %c0_i32_1 = arith.constant 0 : i32
    return %c0_i32, %c0_i32_0 : i32, i32
  }
  func.func @transform_2(%arg0: i32) -> (i32, i32) {
    %c0_i32 = arith.constant 0 : i32
    %c0_i32_0 = arith.constant 0 : i32
    %c0_i32_1 = arith.constant 0 : i32
    return %c0_i32, %c0_i32_0 : i32, i32
  }
  func.func @transform_3(%arg0: i32) -> (i32, i32) {
    %c0_i32 = arith.constant 0 : i32
    %c0_i32_0 = arith.constant 0 : i32
    %c0_i32_1 = arith.constant 0 : i32
    return %c0_i32, %c0_i32_0 : i32, i32
  }
  func.func @transform_4(%arg0: i32) -> (i32, i32) {
    %c0_i32 = arith.constant 0 : i32
    %c0_i32_0 = arith.constant 0 : i32
    %c0_i32_1 = arith.constant 0 : i32
    return %c0_i32, %c0_i32_0 : i32, i32
  }
  func.func @transform_5(%arg0: i32) -> (i32, i32) {
    %c0_i32 = arith.constant 0 : i32
    %c0_i32_0 = arith.constant 0 : i32
    %c0_i32_1 = arith.constant 0 : i32
    return %c0_i32, %c0_i32_0 : i32, i32
  }
}

</mosaic_0001>

<bundles_post_ra>
// kernel: poem_classifier_forward.12
= control target key start
LH: loop header
LB: loop body
LE: loop exit
PB: predicated region body
PF: predicated region fallthrough
CT: control target
= control target key end

     0   :  { %s121_s0 = inlined_call_operand.vmem [shape: f32[16,128], index: 0, kind: input, shape index: {}]   ;;  %s122_s1 = inlined_call_operand.vmem [shape: f32[1,128], index: 1, kind: input, shape index: {}]   ;;  %s123_s2 = inlined_call_operand.vmem [shape: f32[1,128], index: 2, kind: input, shape index: {}]   ;;  %s124_s3 = inlined_call_operand.vmem [shape: bf16[16,128], index: 3, kind: output, shape index: {}]  }
   0x1   :  { %v14_v0 = vld [vmem:[%s121_s0] sm:$0xff]  ;;  %v15_v1 = vld [vmem:[%s121_s0 + $0x8] sm:$0xff] }
   0x2   :  { %16 = vadd.xlane.f32.xlu0 %v14_v0  ;;  %v71_v18 = vld [vmem:[%s122_s1] ss:$0 sm:$0xff] }
   0x3   :  { %v72_v22 = vld [vmem:[%s123_s2] ss:$0 sm:$0xff] }
   0x6   :  { %18 = vadd.xlane.f32.xlu0 %v15_v1 }
  0x8f   :  { %v17_v2 = vpop.xlane.xlu0 %16 }
  0x90   :  { %v21_v3 = vmul.f32 0.0078125, %v17_v2 }
  0x92   :  { %v23_v4 = vsub.f32 %v14_v0, %v21_v3 }
  0x93   :  { %v19_v5 = vpop.xlane.xlu0 %18 }
  0x94   :  { %v22_v6 = vmul.f32 0.0078125, %v19_v5  ;;  %v25_v7 = vmul.f32 %v23_v4, %v23_v4 }
  0x96   :  { %v24_v8 = vsub.f32 %v15_v1, %v22_v6  ;;  %27 = vadd.xlane.f32.xlu1 %v25_v7 }
  0x98   :  { %v26_v9 = vmul.f32 %v24_v8, %v24_v8 }
  0x9a   :  { %29 = vadd.xlane.f32.xlu1 %v26_v9 }
 0x123   :  { %v28_v10 = vpop.xlane.xlu1 %27 }
 0x124   :  { %v31_v11 = vmul.f32 0.0078125, %v28_v10 }
 0x126   :  { %v33_v12 = vadd.f32 1e-12, %v31_v11 }
 0x127   :  { %v30_v13 = vpop.xlane.xlu1 %29 }
 0x128   :  { %82 = vrsqrt.f32 %v33_v12  ;;  %v32_v14 = vmul.f32 0.0078125, %v30_v13 }
 0x12a   :  { %v34_v15 = vadd.f32 1e-12, %v32_v14 }
 0x12c   :  { %84 = vrsqrt.f32 %v34_v15 }
 0x132   :  { %v83_v16 = vpop.eup %82 }
 0x133   :  { %v37_v17 = vmul.f32 %v83_v16, %v23_v4 }
 0x135   :  { %v46_v20 = vmul.f32 %v71_v18, %v37_v17 }
 0x136   :  { %v85_v19 = vpop.eup %84 }
 0x137   :  { %v38_v21 = vmul.f32 %v85_v19, %v24_v8  ;;  %v55_v24 = vadd.f32 %v72_v22, %v46_v20 }
 0x139   :  { %v47_v23 = vmul.f32 %v71_v18, %v38_v21 }
 0x13b   :  { %v56_v25 = vadd.f32 %v72_v22, %v47_v23 }
 0x13d   :  { %v80_v26 = vpack.c.bf16 %v56_v25, %v55_v24 }
 0x13f   :  { %81 = vst [vmem:[%s124_s3] sm:$0xff] %v80_v26  }

// kernel: poem_classifier_forward.13
= control target key start
LH: loop header
LB: loop body
LE: loop exit
PB: predicated region body
PF: predicated region fallthrough
CT: control target
= control target key end

     0   :  { %s769_s12 = smov 0   ;;  %s771_s13 = smov 0   ;;  %s871_s0 = inlined_call_operand.vmem [shape: bf16[16,128], index: 0, kind: input, shape index: {}]   ;;  %s872_s1 = inlined_call_operand.vmem [shape: bf16[128,384], index: 1, kind: input, shape index: {}]   ;;  %s873_s2 = inlined_call_operand.vmem [shape: f32[1,384], index: 2, kind: input, shape index: {}]   ;;  %s874_s3 = inlined_call_operand.vmem [shape: bf16[16,384], index: 3, kind: output, shape index: {}]  }
   0x1   :  { %s773_s14 = smov 0   ;;  %s775_s15 = smov 0  }
   0x2   :  { %s777_s16 = smov 0  }
   0x3 LB: > { %s22_s17 = sadd.s32 1, %s741_s15  ;;  %s594_s18 = sadd.s32 4294967295, %s745_s16   ;;  %s745_s16 = sphi %s777_s16, %s13_s16   ;;  %s741_s15 = sphi %s775_s15, %s879_s15   ;;  %s737_s14 = sphi %s773_s14, %s878_s14   ;;  %s733_s13 = sphi %s771_s13, %s877_s13   ;;  %s729_s12 = sphi %s769_s12, %s876_s12  }
   0x4   : > { %p23_p0 = scmp.ge.s32.totalorder %s22_s17, 3  ;;  %p65_p1 = scmp.ne.s32.totalorder %s733_s13, %s729_s12 }
   0x5   : > { %p66_p2 = scmp.eq.s32.totalorder %s745_s16, 0  ;;  %p123_p4 = scmp.eq.s32.totalorder %s594_s18, 2 }
   0x6   : > { %s881_s17 = smov (%p23_p0, %s22_s17), 0  ;;  %s58_s20 = sadd.s32 1, %s733_s13 }
   0x7   : > { %p67_p3 = por %p66_p2, %p65_p1  ;;  %s55_s19 = ssub.s32 %s741_s15, %s881_s17 }
   0x8   : > { %p56_p5 = scmp.eq.s32.totalorder %s55_s19, 0  ;;  %p804_p6 = por %p123_p4, %p65_p1 }
   0x9   : > { %p598_p7 = scmp.ge.s32.totalorder %s745_s16, 3 }
   0xa   : > { %s809_s22 = scalar_select %p56_p5, %s733_s13, %s58_s20  }
   0xb   : > { %154 = sbr.rel (%p598_p7) target bundleno = 32 (0x20), region = 20 }
  0x12   : > { %157 = sbr.rel (!%p67_p3) target bundleno = 32 (0x20), region = 24  ;;  %s159_s23 = sand.u32 (%p67_p3), 1, %s733_s13  }
  0x13   : > { %s600_s24 = sshll.u32 (%p67_p3), %s741_s15, 2  ;;  %s599_s25 = sshll.u32 (%p67_p3), %s159_s23, 6 }
  0x14   : > { %s817_s28 = scalar_lea.vmem (%p67_p3), %s872_s1, %s600_s24  ;;  %s161_s29 = scalar_lea.vmem (%p67_p3), [#allocation2], %s599_s25 }
  0x15   : > { %v179_v0 = vld [vmem:[%s817_s28] sm:$0xf] (%p67_p3)  ;;  %v181_v1 = vld [vmem:[%s817_s28 + $0xc] sm:$0xf] (%p67_p3)  ;;  %v183_v2 = vld [vmem:[%s817_s28 + $0x18] sm:$0xf] (%p67_p3) }
  0x16   : > { %180 = vst [vmem:[%s161_s29] sm:$0xf] (%p67_p3), %v179_v0  ;;  %182 = vst [vmem:[%s161_s29 + $0x4] sm:$0xf] (%p67_p3), %v181_v1  ;;  %v185_v3 = vld [vmem:[%s817_s28 + $0x24] sm:$0xf] (%p67_p3) }
  0x17   : > { %v187_v4 = vld [vmem:[%s817_s28 + $0x30] sm:$0xf] (%p67_p3)  ;;  %184 = vst [vmem:[%s161_s29 + $0x8] sm:$0xf] (%p67_p3), %v183_v2  ;;  %186 = vst [vmem:[%s161_s29 + $0xc] sm:$0xf] (%p67_p3), %v185_v3 }
  0x18   : > { %188 = vst [vmem:[%s161_s29 + $0x10] sm:$0xf] (%p67_p3), %v187_v4  ;;  %v189_v5 = vld [vmem:[%s817_s28 + $0x3c] sm:$0xf] (%p67_p3)  ;;  %v191_v6 = vld [vmem:[%s817_s28 + $0x48] sm:$0xf] (%p67_p3) }
  0x19   : > { %v193_v7 = vld [vmem:[%s817_s28 + $0x54] sm:$0xf]  ;;  %190 = vst [vmem:[%s161_s29 + $0x14] sm:$0xf] %v189_v5  ;;  %192 = vst [vmem:[%s161_s29 + $0x18] sm:$0xf] %v191_v6 }
  0x1a   : > { %194 = vst [vmem:[%s161_s29 + $0x1c] sm:$0xf] %v193_v7  ;;  %v195_v8 = vld [vmem:[%s817_s28 + $0x60] sm:$0xf]  ;;  %v197_v9 = vld [vmem:[%s817_s28 + $0x6c] sm:$0xf] }
  0x1b   : > { %v199_v10 = vld [vmem:[%s817_s28 + $0x78] sm:$0xf]  ;;  %196 = vst [vmem:[%s161_s29 + $0x20] sm:$0xf] %v195_v8  ;;  %198 = vst [vmem:[%s161_s29 + $0x24] sm:$0xf] %v197_v9 }
  0x1c   : > { %200 = vst [vmem:[%s161_s29 + $0x28] sm:$0xf] %v199_v10  ;;  %v201_v11 = vld [vmem:[%s817_s28 + $0x84] sm:$0xf]  ;;  %v203_v12 = vld [vmem:[%s817_s28 + $0x90] sm:$0xf] }
  0x1d   : > { %v205_v13 = vld [vmem:[%s817_s28 + $0x9c] sm:$0xf]  ;;  %202 = vst [vmem:[%s161_s29 + $0x2c] sm:$0xf] %v201_v11  ;;  %204 = vst [vmem:[%s161_s29 + $0x30] sm:$0xf] %v203_v12 }
  0x1e   : > { %206 = vst [vmem:[%s161_s29 + $0x34] sm:$0xf] %v205_v13  ;;  %v207_v14 = vld [vmem:[%s817_s28 + $0xa8] sm:$0xf]  ;;  %v209_v15 = vld [vmem:[%s817_s28 + $0xb4] sm:$0xf] }
  0x1f   : > { %208 = vst [vmem:[%s161_s29 + $0x38] sm:$0xf] %v207_v14  ;;  %210 = vst [vmem:[%s161_s29 + $0x3c] sm:$0xf] %v209_v15 }
  0x20 PF: > { %p601_p8 = scmp.ge.s32.totalorder %s745_s16, 1  ;;  %p270_p9 = scmp.lt.s32.totalorder %s745_s16, 4 }
  0x22   : > { %p271_p10 = pnand %p601_p8, %p270_p9 }
  0x23   : > { %s277_s30 = sand.u32 (!%p271_p10), 1, %s729_s12   ;;  %v747_v16 = vmov (!%p271_p10), 0.0   ;;  %vm748_vm0 = vmmov (!%p271_p10), 0   ;;  %v706_v25 = vld [vmem:[%s871_s0] sm:$0xff] (!%p271_p10)   ;;  %p313_p11 = scmp.lt.s32.totalorder (!%p271_p10), %s737_s14, 2 }
  0x24   : > { %274 = sbr.rel (%p271_p10) target bundleno = 297 (0x129), region = 69  ;;  %636 = vmatprep.subr.bf16.mxu0 (!%p271_p10), %v747_v16  ;;  %s602_s4 = sshll.u32 (!%p271_p10), %s277_s30, 6  ;;  %652 = vmatprep.mubr.msk.bf16.mxu0 (!%p271_p10), %vm748_vm0, %v747_v16 }
  0x25   : > { %s279_s5 = scalar_lea.vmem (!%p271_p10), [#allocation2], %s602_s4  ;;  %s603_s18 = sshll.u32 (!%p271_p10), %s277_s30, 3 }
  0x26   : > { %v698_v17 = vld [vmem:[%s279_s5] sm:$0xff] (!%p271_p10)   ;;  %v699_v18 = vld [vmem:[%s279_s5 + $0x8] sm:$0xff] (!%p271_p10)   ;;  %v700_v19 = vld [vmem:[%s279_s5 + $0x10] sm:$0xff] (!%p271_p10)   ;;  %s306_s19 = scalar_lea.vmem (!%p271_p10), [#allocation3], %s603_s18 }
  0x27   : > { %637 = vmatpush3.bf16.msra.mxu0 (!%p271_p10), %v698_v17  ;;  %v701_v20 = vld [vmem:[%s279_s5 + $0x18] sm:$0xff] (!%p271_p10)   ;;  %v702_v21 = vld [vmem:[%s279_s5 + $0x20] sm:$0xff] (!%p271_p10)   ;;  %v703_v22 = vld [vmem:[%s279_s5 + $0x28] sm:$0xff] (!%p271_p10)  }
  0x28   : > { %638 = vmatprep.subr.bf16.mxu0 (!%p271_p10), %v747_v16  ;;  %v704_v23 = vld [vmem:[%s279_s5 + $0x30] sm:$0xff] (!%p271_p10)   ;;  %v705_v24 = vld [vmem:[%s279_s5 + $0x38] sm:$0xff] (!%p271_p10)  }
  0x2b   : > { %639 = vmatpush3.bf16.msra.mxu0 %v699_v18  ;;  %s314_s8 = scalar_select %p313_p11, %s737_s14, 2 }
  0x2c   : > { %640 = vmatprep.subr.bf16.mxu0 %v747_v16  ;;  %s617_s20 = sshll.u32 (%p804_p6), %s737_s14, 2 }
  0x2d   : > { %s315_s11 = scalar_lea.vmem %s873_s2, %s314_s8  ;;  %s459_s25 = scalar_lea.vmem (%p804_p6), %s874_s3, %s617_s20 }
  0x2e   : > { %v604_v26 = vld [vmem:[%s315_s11] ss:$0 sm:$0xff] }
  0x2f   : > { %641 = vmatpush3.bf16.msra.mxu0 %v700_v19 }
  0x30   : > { %642 = vmatprep.subr.bf16.mxu0 %v747_v16 }
  0x33   : > { %643 = vmatpush3.bf16.msra.mxu0 %v701_v20 }
  0x34   : > { %644 = vmatprep.subr.bf16.mxu0 %v747_v16 }
  0x37   : > { %645 = vmatpush3.bf16.msra.mxu0 %v702_v21 }
  0x38   : > { %646 = vmatprep.subr.bf16.mxu0 %v747_v16 }
  0x3b   : > { %647 = vmatpush3.bf16.msra.mxu0 %v703_v22 }
  0x3c   : > { %648 = vmatprep.subr.bf16.mxu0 %v747_v16 }
  0x3f   : > { %649 = vmatpush3.bf16.msra.mxu0 %v704_v23 }
  0x40   : > { %650 = vmatprep.subr.bf16.mxu0 %v747_v16 }
  0x43   : > { %651 = vmatpush3.bf16.msra.mxu0 %v705_v24 }
  0x46   : > { %653 = vmatmul.mubr.bf16.vlgmr.msra.gmra.mrb[0].mxu0 %v706_v25 }
 0x119   : > { %v431_v27 = vpop.f32.mrb[0].mxu0 }
 0x11a   : > { %v654_v28 = vpop.f32.mrb[1].mxu0  ;;  %v432_v30 = vadd.f32 %v604_v26, %v431_v27  ;;  %454 = sbr.rel (!%p804_p6) target bundleno = 297 (0x129), region = 77 }
 0x11b   : > { %v434_v29 = vpop.f32.mrb[2].mxu0 }
 0x11c   : > { %v435_v31 = vadd.f32 %v604_v26, %v434_v29  ;;  %v655_v32 = vpop.f32.mrb[3].mxu0 }
 0x11e   : > { %v625_v33 = vpack.c.bf16 %v435_v31, %v432_v30 }
 0x120   : > { %626 = vst [vmem:[%s306_s19] sm:$0xff] %v625_v33  }
 0x127   : > { %v475_v34 = vld [vmem:[%s306_s19] sm:$0xf]  ;;  %v477_v35 = vld [vmem:[%s306_s19 + $0x4] sm:$0xf] }
 0x128   : > { %476 = vst [vmem:[%s459_s25] sm:$0xf] %v475_v34  ;;  %478 = vst [vmem:[%s459_s25 + $0xc] sm:$0xf] %v477_v35 }
 0x129 PF: > { %s13_s16 = sadd.s32 1, %s745_s16   ;;  %s876_s12 = smov %s733_s13 }
 0x12a   : > { %p10_p12 = scmp.ge.s32.totalorder %s13_s16, 5   ;;  %s877_s13 = smov %s809_s22 }
 0x12b   : > { %s878_s14 = smov %s741_s15  ;;  %s879_s15 = smov %s881_s17 }
 0x12c   :  { %12 = sbr.rel (!%p10_p12) target bundleno = 3 (0x3), region = 155 }

// kernel: poem_classifier_forward.15
= control target key start
LH: loop header
LB: loop body
LE: loop exit
PB: predicated region body
PF: predicated region fallthrough
CT: control target
= control target key end

     0   :  { %v274_v0 = vmov 0.0   ;;  %vm275_vm0 = vmmov 0   ;;  %s353_s1 = inlined_call_operand.vmem [shape: bf16[128,128], index: 1, kind: input, shape index: {}]   ;;  %s354_s0 = inlined_call_operand.vmem [shape: bf16[16,128], index: 0, kind: input, shape index: {}]   ;;  %s355_s3 = inlined_call_operand.vmem [shape: bf16[16,128], index: 3, kind: input, shape index: {}]   ;;  %s356_s2 = inlined_call_operand.vmem [shape: f32[1,128], index: 2, kind: input, shape index: {}]   ;;  %s357_s4 = inlined_call_operand.vmem [shape: f32[1,128], index: 4, kind: input, shape index: {}]   ;;  %s358_s5 = inlined_call_operand.vmem [shape: f32[1,128], index: 5, kind: input, shape index: {}]   ;;  %s359_s6 = inlined_call_operand.vmem [shape: bf16[16,128], index: 6, kind: output, shape index: {}]  }
   0x1   :  { %239 = vmatprep.subr.bf16.mxu0 %v274_v0  ;;  %v261_v1 = vld [vmem:[%s353_s1] sm:$0xff]   ;;  %255 = vmatprep.mubr.msk.bf16.mxu0 %vm275_vm0, %v274_v0  ;;  %v262_v2 = vld [vmem:[%s353_s1 + $0x8] sm:$0xff]   ;;  %v263_v3 = vld [vmem:[%s353_s1 + $0x10] sm:$0xff]  }
   0x2   :  { %240 = vmatpush3.bf16.msra.mxu0 %v261_v1  ;;  %v264_v4 = vld [vmem:[%s353_s1 + $0x18] sm:$0xff]   ;;  %v265_v5 = vld [vmem:[%s353_s1 + $0x20] sm:$0xff]   ;;  %v266_v6 = vld [vmem:[%s353_s1 + $0x28] sm:$0xff]  }
   0x3   :  { %241 = vmatprep.subr.bf16.mxu0 %v274_v0  ;;  %v267_v7 = vld [vmem:[%s353_s1 + $0x30] sm:$0xff]   ;;  %v268_v8 = vld [vmem:[%s353_s1 + $0x38] sm:$0xff]   ;;  %v269_v9 = vld [vmem:[%s354_s0] sm:$0xff]  }
   0x4   :  { %v222_v10 = vld [vmem:[%s355_s3] sm:$0xff]  }
   0x5   :  { %v205_v11 = vld [vmem:[%s356_s2] ss:$0 sm:$0xff]  ;;  %v223_v12 = vunpack.c.l.bf16 %v222_v10  ;;  %v224_v20 = vunpack.c.h.bf16 %v222_v10 }
   0x6   :  { %242 = vmatpush3.bf16.msra.mxu0 %v262_v2  ;;  %v215_v38 = vld [vmem:[%s357_s4] ss:$0 sm:$0xff] }
   0x7   :  { %243 = vmatprep.subr.bf16.mxu0 %v274_v0  ;;  %v216_v42 = vld [vmem:[%s358_s5] ss:$0 sm:$0xff] }
   0xa   :  { %244 = vmatpush3.bf16.msra.mxu0 %v263_v3 }
   0xb   :  { %245 = vmatprep.subr.bf16.mxu0 %v274_v0 }
   0xe   :  { %246 = vmatpush3.bf16.msra.mxu0 %v264_v4 }
   0xf   :  { %247 = vmatprep.subr.bf16.mxu0 %v274_v0 }
  0x12   :  { %248 = vmatpush3.bf16.msra.mxu0 %v265_v5 }
  0x13   :  { %249 = vmatprep.subr.bf16.mxu0 %v274_v0 }
  0x16   :  { %250 = vmatpush3.bf16.msra.mxu0 %v266_v6 }
  0x17   :  { %251 = vmatprep.subr.bf16.mxu0 %v274_v0 }
  0x1a   :  { %252 = vmatpush3.bf16.msra.mxu0 %v267_v7 }
  0x1b   :  { %253 = vmatprep.subr.bf16.mxu0 %v274_v0 }
  0x1e   :  { %254 = vmatpush3.bf16.msra.mxu0 %v268_v8 }
  0x21   :  { %256 = vmatmul.mubr.bf16.vlgmr.msra.gmra.mrb[0].mxu0 %v269_v9 }
  0xf4   :  { %v137_v13 = vpop.f32.mrb[0].mxu0 }
  0xf5   :  { %v138_v14 = vadd.f32 %v205_v11, %v137_v13  ;;  %v257_v15 = vpop.f32.mrb[1].mxu0 }
  0xf6   :  { %v140_v16 = vpop.f32.mrb[2].mxu0 }
  0xf7   :  { %v141_v17 = vadd.f32 %v205_v11, %v140_v16  ;;  %v258_v18 = vpop.f32.mrb[3].mxu0  ;;  %v148_v19 = vadd.f32 %v223_v12, %v138_v14 }
  0xf9   :  { %150 = vadd.xlane.f32.xlu0 %v148_v19  ;;  %v149_v21 = vadd.f32 %v224_v20, %v141_v17 }
  0xfd   :  { %152 = vadd.xlane.f32.xlu0 %v149_v21 }
 0x186   :  { %v151_v22 = vpop.xlane.xlu0 %150 }
 0x187   :  { %v155_v23 = vmul.f32 0.0078125, %v151_v22 }
 0x189   :  { %v157_v24 = vsub.f32 %v148_v19, %v155_v23 }
 0x18a   :  { %v153_v25 = vpop.xlane.xlu0 %152 }
 0x18b   :  { %v156_v26 = vmul.f32 0.0078125, %v153_v25  ;;  %v159_v27 = vmul.f32 %v157_v24, %v157_v24 }
 0x18d   :  { %v158_v28 = vsub.f32 %v149_v21, %v156_v26  ;;  %161 = vadd.xlane.f32.xlu1 %v159_v27 }
 0x18f   :  { %v160_v29 = vmul.f32 %v158_v28, %v158_v28 }
 0x191   :  { %163 = vadd.xlane.f32.xlu1 %v160_v29 }
 0x21a   :  { %v162_v30 = vpop.xlane.xlu1 %161 }
 0x21b   :  { %v165_v31 = vmul.f32 0.0078125, %v162_v30 }
 0x21d   :  { %v167_v32 = vadd.f32 1e-12, %v165_v31 }
 0x21e   :  { %v164_v33 = vpop.xlane.xlu1 %163 }
 0x21f   :  { %270 = vrsqrt.f32 %v167_v32  ;;  %v166_v34 = vmul.f32 0.0078125, %v164_v33 }
 0x221   :  { %v168_v35 = vadd.f32 1e-12, %v166_v34 }
 0x223   :  { %272 = vrsqrt.f32 %v168_v35 }
 0x229   :  { %v271_v36 = vpop.eup %270 }
 0x22a   :  { %v171_v37 = vmul.f32 %v271_v36, %v157_v24 }
 0x22c   :  { %v180_v40 = vmul.f32 %v215_v38, %v171_v37 }
 0x22d   :  { %v273_v39 = vpop.eup %272 }
 0x22e   :  { %v172_v41 = vmul.f32 %v273_v39, %v158_v28  ;;  %v189_v44 = vadd.f32 %v216_v42, %v180_v40 }
 0x230   :  { %v181_v43 = vmul.f32 %v215_v38, %v172_v41 }
 0x232   :  { %v190_v45 = vadd.f32 %v216_v42, %v181_v43 }
 0x234   :  { %v228_v46 = vpack.c.bf16 %v190_v45, %v189_v44 }
 0x236   :  { %229 = vst [vmem:[%s359_s6] sm:$0xff] %v228_v46  }

// kernel: poem_classifier_forward.14
= control target key start
LH: loop header
LB: loop body
LE: loop exit
PB: predicated region body
PF: predicated region fallthrough
CT: control target
= control target key end

     0   :  { %s879_s15 = smov 0   ;;  %s881_s16 = smov 0   ;;  %s950_s0 = inlined_call_operand.vmem [shape: bf16[2,8,384], index: 0, kind: input, shape index: {}, may-alias: {0,1,2}]   ;;  %s951_s1 = inlined_call_operand.vmem [shape: bf16[2,8,384], index: 1, kind: input, shape index: {}, may-alias: {0,1,2}]   ;;  %s952_s2 = inlined_call_operand.vmem [shape: bf16[2,8,384], index: 2, kind: input, shape index: {}, may-alias: {0,1,2}]   ;;  %s953_s3 = inlined_call_operand.vmem [shape: f32[2,1,8], index: 3, kind: input, shape index: {}]   ;;  %s954_s4 = inlined_call_operand.vmem [shape: bf16[2,8,128], index: 4, kind: output, shape index: {}]  }
   0x1   :  { %s883_s17 = smov 0  }
   0x2 LB: > { %s33_s18 = sadd.s32 1, %s845_s16  ;;  %p735_p0 = scmp.ge.s32.totalorder %s849_s17, 1  ;;  %s849_s17 = sphi %s883_s17, %s14_s17   ;;  %s845_s16 = sphi %s881_s16, %s956_s16   ;;  %s841_s15 = sphi %s879_s15, %s955_s15  }
   0x3   : > { %p35_p1 = scmp.ge.s32.totalorder %s33_s18, 2  ;;  %p242_p2 = scmp.lt.s32.totalorder %s849_s17, 3 }
   0x5   : > { %s958_s18 = smov (%p35_p1, %s33_s18), 0  ;;  %p243_p3 = pnand %p735_p0, %p242_p2 }
   0x6   : > { %p301_p4 = scmp.lt.s32.totalorder (!%p243_p3), %s841_s15, 1  ;;  %v851_v0 = vmov (!%p243_p3), 0.0   ;;  %vm852_vm0 = vmmov (!%p243_p3), 0   ;;  %vm356_vm1 = vcmask (!%p243_p3), 523264   ;;  %s853_s27 = smov (!%p243_p3), 64   ;;  %vm403_vm2 = vcmask (!%p243_p3), 64512  }
   0x7   : > { %246 = sbr.rel (%p243_p3) target bundleno = 1006 (0x3ee), region = 36  ;;  %768 = vmatprep.subr.bf16.mxu1 (!%p243_p3), %v851_v0  ;;  %762 = vmatprep.subr.bf16.mxu0 (!%p243_p3), %v851_v0  ;;  %vm487_vm3 = vcmask (!%p243_p3), 1043456  }
   0x8   : > { %770 = vmatprep.mubr.msk.bf16.mxu1 (!%p243_p3), %vm852_vm0, %v851_v0  ;;  %764 = vmatprep.mubr.msk.bf16.mxu0 (!%p243_p3), %vm852_vm0, %v851_v0 }
   0xe   : > { %s960_s15 = smov (!%p301_p4, %s841_s15), 1 }
   0xf   : > { %s902_s19 = smul.u32 12, %s960_s15  ;;  %s335_s30 = scalar_lea.vmem %s953_s3, %s960_s15 }
  0x10   : > { %v740_v13 = vld [vmem:[%s335_s30] ss:$0 sm:$0xff]  ;;  %s739_s9 = sshll.u32 %s960_s15, 2 }
  0x11   : > { %s751_s20 = sadd.s32 4, %s902_s19  ;;  %s312_s23 = scalar_lea.vmem %s950_s0, %s902_s19 }
  0x12   : > { %s321_s26 = scalar_lea.vmem %s951_s1, %s751_s20  ;;  %v348_v2 = vld [vmem:[%s312_s23] sm:$0xf]  ;;  %s753_s5 = sadd.s32 8, %s902_s19 }
  0x13   : > { %v349_v1 = vld [vmem:[%s321_s26] sm:$0xf]  ;;  %v742_v5 = vcombine.low %v348_v2, %v348_v2  ;;  %s331_s8 = scalar_lea.vmem %s952_s2, %s753_s5  ;;  %s345_s12 = scalar_lea.vmem %s954_s4, %s739_s9 }
  0x14   : > { %v743_v3 = vcombine.low %v349_v1, %v349_v1  ;;  %v361_v4 = vsel %vm356_vm1, %v349_v1, 0  ;;  %v483_v22 = vld [vmem:[%s331_s8] sm:$0xf] }
  0x15   : > { %763 = vmatpush3.bf16.xpose.msra.mxu0 %v361_v4  ;;  %v746_v23 = vcombine.low %v483_v22, %v483_v22  ;;  %v489_v35 = vsel %vm487_vm3, %v483_v22, 0 }
  0x16   : > { %423 = vrot.lane.b32.xlu0 %v743_v3, %s853_s27  ;;  %774 = vmatprep.subr.bf16.mxu0 %v851_v0 }
  0x1a   : > { %418 = vrot.lane.b32.xlu0 %v742_v5, %s853_s27 }
  0x1c   : > { %765 = vmatmul.mubr.msk.bf16.vlgmr.msra.gmra.mrb[0].mxu0 %vm356_vm1, %v348_v2 }
  0x1d   : > { %776 = vmatprep.mubr.msk.bf16.mxu0 %vm852_vm0, %v851_v0  ;;  %775 = vmatpush3.bf16.msra.mxu0 %v489_v35 }
  0x88   : > { %v424_v6 = vpop.permute.xlu0 %423 }
  0x89   : > { %v429_v7 = vsel %vm356_vm1, %v424_v6, 0 }
  0x8a   : > { %769 = vmatpush3.bf16.xpose.msra.mxu1 %v429_v7 }
  0x8b   : > { %780 = vmatprep.subr.bf16.mxu1 %v851_v0 }
  0x8c   : > { %v419_v8 = vpop.permute.xlu0 %418 }
  0x91   : > { %771 = vmatmul.mubr.msk.bf16.vlgmr.msra.gmra.mrb[0].mxu1 %vm356_vm1, %v419_v8 }
  0x92   : > { %782 = vmatprep.mubr.msk.bf16.mxu1 %vm852_vm0, %v851_v0 }
  0xef   : > { %v397_v9 = vpop.f32.mrb[0].mxu0 }
  0xf0   : > { %v766_v10 = vpop.f32.mrb[1].mxu0  ;;  %v398_v17 = vadd.f32 %v740_v13, %v397_v9 }
  0xf1   : > { %v400_v11 = vpop.f32.mrb[2].mxu0 }
  0xf2   : > { %v767_v12 = vpop.f32.mrb[3].mxu0  ;;  %v404_v21 = vsel %vm403_vm2, %v398_v17, -inf }
 0x164   : > { %v465_v14 = vpop.f32.mrb[0].mxu1 }
 0x165   : > { %v466_v15 = vadd.f32 %v740_v13, %v465_v14  ;;  %v772_v16 = vpop.f32.mrb[1].mxu1 }
 0x166   : > { %v468_v18 = vpop.f32.mrb[2].mxu1 }
 0x167   : > { %v773_v19 = vpop.f32.mrb[3].mxu1  ;;  %v471_v20 = vsel %vm403_vm2, %v466_v15, -inf }
 0x168   : > { %472 = vmax.xlane.f32.xlu1 %v471_v20 }
 0x16c   : > { %405 = vmax.xlane.f32.xlu1 %v404_v21 }
 0x17d   : > { %535 = vrot.lane.b32.xlu1 %v746_v23, %s853_s27 }
 0x1f5   : > { %v473_v24 = vpop.xlane.xlu1 %472 }
 0x1f6   : > { %v474_v25 = vsub.f32 %v466_v15, %v473_v24 }
 0x1f8   : > { %v475_v26 = vmul.f32 1.442695, %v474_v25 }
 0x1f9   : > { %v406_v27 = vpop.xlane.xlu1 %405 }
 0x1fa   : > { %819 = vpow2.f32 %v475_v26  ;;  %v407_v28 = vsub.f32 %v398_v17, %v406_v27 }
 0x1fc   : > { %v408_v29 = vmul.f32 1.442695, %v407_v28 }
 0x1fd   : > { %v536_v34 = vpop.permute.xlu1 %535 }
 0x1fe   : > { %821 = vpow2.f32 %v408_v29  ;;  %v541_v36 = vsel %vm487_vm3, %v536_v34, 0 }
 0x1ff   : > { %781 = vmatpush3.bf16.msra.mxu1 %v541_v36 }
 0x204   : > { %v820_v30 = vpop.eup %819 }
 0x205   : > { %v477_v31 = vsel %vm403_vm2, %v820_v30, 0.0 }
 0x206   : > { %478 = vadd.xlane.f32.xlu0 %v477_v31 }
 0x208   : > { %v822_v32 = vpop.eup %821 }
 0x209   : > { %v410_v33 = vsel %vm403_vm2, %v822_v32, 0.0 }
 0x20a   : > { %411 = vadd.xlane.f32.xlu1 %v410_v33 }
 0x293   : > { %v479_v37 = vpop.xlane.xlu0 %478 }
 0x294   : > { %823 = vrcp.f32 %v479_v37 }
 0x297   : > { %v412_v38 = vpop.xlane.xlu1 %411 }
 0x298   : > { %825 = vrcp.f32 %v412_v38 }
 0x29e   : > { %v824_v39 = vpop.eup %823 }
 0x29f   : > { %v481_v40 = vmul.f32 %v824_v39, %v820_v30 }
 0x2a1   : > { %v531_v41 = vpack.c.bf16 %v481_v40, %v481_v40 }
 0x2a2   : > { %v826_v42 = vpop.eup %825 }
 0x2a3   : > { %v414_v43 = vmul.f32 %v826_v42, %v822_v32  ;;  %783 = vmatmul.mubr.msk.bf16.vlgmr.msra.gmra.mrb[4].mxu1 %vm403_vm2, %v531_v41 }
 0x2a5   : > { %v482_v44 = vpack.c.bf16 %v414_v43, %v414_v43 }
 0x2a7   : > { %777 = vmatmul.mubr.msk.bf16.vlgmr.msra.gmra.mrb[4].mxu0 %vm403_vm2, %v482_v44 }
 0x376   : > { %v577_v45 = vpop.f32.mrb[4].mxu1 }
 0x377   : > { %584 = vrot.lane.b32.xlu0 %v577_v45, %s853_s27  ;;  %v784_v46 = vpop.f32.mrb[5].mxu1 }
 0x378   : > { %v580_v47 = vpop.f32.mrb[6].mxu1 }
 0x379   : > { %v785_v48 = vpop.f32.mrb[7].mxu1 }
 0x37a   : > { %v525_v49 = vpop.f32.mrb[4].mxu0 }
 0x37b   : > { %v778_v50 = vpop.f32.mrb[5].mxu0 }
 0x37c   : > { %v528_v51 = vpop.f32.mrb[6].mxu0 }
 0x37d   : > { %v779_v52 = vpop.f32.mrb[7].mxu0 }
 0x3e9   : > { %v585_v53 = vpop.permute.xlu0 %584 }
 0x3ea   : > { %v587_v54 = vsel %vm356_vm1, %v525_v49, %v585_v53 }
 0x3eb   : > { %v588_v55 = vpack.c.bf16 %v587_v54, %v587_v54 }
 0x3ed   : > { %589 = vst [vmem:[%s345_s12] sm:$0xf] %v588_v55 }
 0x3ee PF: > { %s14_s17 = sadd.s32 1, %s849_s17   ;;  %s955_s15 = smov %s845_s16 }
 0x3ef   : > { %p11_p5 = scmp.ge.s32.totalorder %s14_s17, 4   ;;  %s956_s16 = smov %s958_s18 }
 0x3f1   :  { %13 = sbr.rel (!%p11_p5) target bundleno = 2 (0x2), region = 75 }

// kernel: poem_classifier_forward.16
= control target key start
LH: loop header
LB: loop body
LE: loop exit
PB: predicated region body
PF: predicated region fallthrough
CT: control target
= control target key end

     0   :  { %v267_v1 = vmov 0   ;;  %v35_v18 = vlaneseq  ;;  %s348_s1 = inlined_call_operand.vmem [shape: bf16[128,256], index: 1, kind: input, shape index: {}]   ;;  %s349_s0 = inlined_call_operand.vmem [shape: bf16[16,128], index: 0, kind: input, shape index: {}]   ;;  %s350_s2 = inlined_call_operand.vmem [shape: f32[1,256], index: 2, kind: input, shape index: {}]   ;;  %s351_s3 = inlined_call_operand.vmem [shape: bf16[16,256], index: 3, kind: output, shape index: {}]  }
   0x1   :  { %v234_v0 = vld [vmem:[%s348_s1 + $0x4] ss:$8 sps:$4 sm:$0xff]   ;;  %163 = vmatprep.mubr.bf16.mxu0 %v267_v1  ;;  %v236_v2 = vld [vmem:[%s348_s1] ss:$8 sps:$4 sm:$0xff]   ;;  %v237_v3 = vld [vmem:[%s348_s1 + $0x14] ss:$8 sps:$4 sm:$0xff]  }
   0x2   :  { %131 = vmatprep.subr.bf16.mxu0 %v234_v0  ;;  %v239_v4 = vld [vmem:[%s348_s1 + $0x10] ss:$8 sps:$4 sm:$0xff]   ;;  %v240_v5 = vld [vmem:[%s348_s1 + $0x24] ss:$8 sps:$4 sm:$0xff]   ;;  %v242_v6 = vld [vmem:[%s348_s1 + $0x20] ss:$8 sps:$4 sm:$0xff]  }
   0x3   :  { %132 = vmatpush1.bf16.msra.mxu0 %v236_v2  ;;  %v243_v7 = vld [vmem:[%s348_s1 + $0x34] ss:$8 sps:$4 sm:$0xff]   ;;  %v245_v8 = vld [vmem:[%s348_s1 + $0x30] ss:$8 sps:$4 sm:$0xff]   ;;  %v246_v9 = vld [vmem:[%s348_s1 + $0x44] ss:$8 sps:$4 sm:$0xff]  }
   0x4   :  { %133 = vmatprep.subr.bf16.mxu0 %v237_v3  ;;  %v248_v10 = vld [vmem:[%s348_s1 + $0x40] ss:$8 sps:$4 sm:$0xff]   ;;  %v249_v11 = vld [vmem:[%s348_s1 + $0x54] ss:$8 sps:$4 sm:$0xff]   ;;  %v251_v12 = vld [vmem:[%s348_s1 + $0x50] ss:$8 sps:$4 sm:$0xff]  }
   0x5   :  { %v252_v13 = vld [vmem:[%s348_s1 + $0x64] ss:$8 sps:$4 sm:$0xff]   ;;  %v254_v14 = vld [vmem:[%s348_s1 + $0x60] ss:$8 sps:$4 sm:$0xff]   ;;  %v255_v15 = vld [vmem:[%s348_s1 + $0x74] ss:$8 sps:$4 sm:$0xff]  }
   0x6   :  { %v257_v16 = vld [vmem:[%s348_s1 + $0x70] ss:$8 sps:$4 sm:$0xff]   ;;  %v258_v17 = vld [vmem:[%s349_s0] sm:$0xff]   ;;  %v36_v19 = vshrl.u32 %v35_v18, 7 }
   0x7   :  { %134 = vmatpush1.bf16.msra.mxu0 %v239_v4  ;;  %v33_v21 = vld [vmem:[%s350_s2] sm:$0x3] }
   0x8   :  { %135 = vmatprep.subr.bf16.mxu0 %v240_v5  ;;  %v37_v20 = vsub.s32 0, %v36_v19  ;;  %v41_v22 = vsub.s32 1, %v36_v19 }
   0xa   :  { %v38_v23 = vrot.slane %v33_v21, %v37_v20  ;;  %v42_v24 = vrot.slane %v33_v21, %v41_v22 }
   0xb   :  { %136 = vmatpush1.bf16.msra.mxu0 %v242_v6 }
   0xc   :  { %137 = vmatprep.subr.bf16.mxu0 %v243_v7 }
   0xf   :  { %138 = vmatpush1.bf16.msra.mxu0 %v245_v8 }
  0x10   :  { %139 = vmatprep.subr.bf16.mxu0 %v246_v9 }
  0x13   :  { %140 = vmatpush1.bf16.msra.mxu0 %v248_v10 }
  0x14   :  { %141 = vmatprep.subr.bf16.mxu0 %v249_v11 }
  0x17   :  { %142 = vmatpush1.bf16.msra.mxu0 %v251_v12 }
  0x18   :  { %143 = vmatprep.subr.bf16.mxu0 %v252_v13 }
  0x1b   :  { %144 = vmatpush1.bf16.msra.mxu0 %v254_v14 }
  0x1c   :  { %145 = vmatprep.subr.bf16.mxu0 %v255_v15 }
  0x1f   :  { %146 = vmatpush1.bf16.msra.mxu0 %v257_v16 }
  0x22   :  { %164 = vmatmul.mubr.bf16.vlgmr.msra.gmra.mrb[0].mxu0 %v258_v17 }
  0xf5   :  { %v165_v25 = vpop.f32.mrb[0].mxu0 }
  0xf6   :  { %v166_v26 = vadd.f32 %v165_v25, %v38_v23  ;;  %v167_v27 = vpop.f32.mrb[1].mxu0 }
  0xf7   :  { %v168_v28 = vadd.f32 %v167_v27, %v42_v24  ;;  %v169_v29 = vpop.f32.mrb[2].mxu0 }
  0xf8   :  { %v178_v30 = vmul.f32 0.70710677, %v166_v26  ;;  %v170_v31 = vadd.f32 %v169_v29, %v38_v23  ;;  %v171_v32 = vpop.f32.mrb[3].mxu0  ;;  %v174_v39 = vmul.f32 0.5, %v166_v26 }
  0xf9   :  { %v179_v33 = vmul.f32 0.70710677, %v168_v28  ;;  %v172_v34 = vadd.f32 %v171_v32, %v42_v24  ;;  %v175_v42 = vmul.f32 0.5, %v168_v28 }
  0xfa   :  { %259 = verf.f32 %v178_v30  ;;  %v180_v35 = vmul.f32 0.70710677, %v170_v31  ;;  %v176_v46 = vmul.f32 0.5, %v170_v31 }
  0xfb   :  { %261 = verf.f32 %v179_v33  ;;  %v181_v36 = vmul.f32 0.70710677, %v172_v34  ;;  %v177_v49 = vmul.f32 0.5, %v172_v34 }
  0xfc   :  { %263 = verf.f32 %v180_v35 }
  0xfd   :  { %265 = verf.f32 %v181_v36 }
 0x104   :  { %v260_v37 = vpop.eup %259 }
 0x105   :  { %v262_v38 = vpop.eup %261  ;;  %v186_v40 = vadd.f32 1.0, %v260_v37 }
 0x106   :  { %v264_v41 = vpop.eup %263  ;;  %v187_v43 = vadd.f32 1.0, %v262_v38 }
 0x107   :  { %v266_v44 = vpop.eup %265  ;;  %v190_v45 = vmul.f32 %v186_v40, %v174_v39  ;;  %v188_v47 = vadd.f32 1.0, %v264_v41 }
 0x108   :  { %v191_v48 = vmul.f32 %v187_v43, %v175_v42  ;;  %v189_v50 = vadd.f32 1.0, %v266_v44 }
 0x109   :  { %v192_v51 = vmul.f32 %v188_v47, %v176_v46 }
 0x10a   :  { %v231_v52 = vpack.c.bf16 %v191_v48, %v190_v45  ;;  %v193_v53 = vmul.f32 %v189_v50, %v177_v49 }
 0x10c   :  { %206 = vst [vmem:[%s351_s3] sm:$0xff] %v231_v52  ;;  %v232_v54 = vpack.c.bf16 %v193_v53, %v192_v51 }
 0x10e   :  { %207 = vst [vmem:[%s351_s3 + $0x8] sm:$0xff] %v232_v54 }

// kernel: poem_classifier_forward.23
= control target key start
LH: loop header
LB: loop body
LE: loop exit
PB: predicated region body
PF: predicated region fallthrough
CT: control target
= control target key end

     0   :  { %v384_v1 = vmov 0.0   ;;  %vm385_vm0 = vmmov 0   ;;  %s486_s0 = inlined_call_operand.vmem [shape: bf16[2,128], index: 0, kind: input, shape index: {}]   ;;  %s487_s1 = inlined_call_operand.vmem [shape: bf16[128,128], index: 1, kind: input, shape index: {}]   ;;  %s488_s2 = inlined_call_operand.vmem [shape: f32[1,128], index: 2, kind: input, shape index: {}]   ;;  %s489_s3 = inlined_call_operand.vmem [shape: bf16[128,3], index: 3, kind: input, shape index: {}]   ;;  %s490_s4 = inlined_call_operand.vmem [shape: f32[1,3], index: 4, kind: input, shape index: {}]   ;;  %s491_s5 = inlined_call_operand.hbm [shape: f32[2,3], index: 5, kind: output, shape index: {}]  }
   0x1   :  { %v342_v0 = vld [vmem:[%s487_s1] sm:$0xff]   ;;  %299 = vmatprep.subr.bf16.mxu0 %v384_v1  ;;  %319 = vmatprep.subr.bf16.mxu1 %v384_v1  ;;  %v343_v2 = vld [vmem:[%s487_s1 + $0x8] sm:$0xff]   ;;  %v344_v3 = vld [vmem:[%s487_s1 + $0x10] sm:$0xff]  }
   0x2   :  { %300 = vmatpush3.bf16.msra.mxu0 %v342_v0  ;;  %315 = vmatprep.mubr.msk.bf16.mxu0 %vm385_vm0, %v384_v1  ;;  %v350_v4 = vld [vmem:[%s489_s3] sm:$0xff]   ;;  %v345_v5 = vld [vmem:[%s487_s1 + $0x18] sm:$0xff]   ;;  %v351_v6 = vld [vmem:[%s489_s3 + $0x8] sm:$0xff]  }
   0x3   :  { %301 = vmatprep.subr.bf16.mxu0 %v384_v1  ;;  %335 = vmatprep.mubr.msk.bf16.mxu1 %vm385_vm0, %v384_v1  ;;  %v346_v7 = vld [vmem:[%s487_s1 + $0x20] sm:$0xff]   ;;  %v352_v8 = vld [vmem:[%s489_s3 + $0x10] sm:$0xff]  }
   0x4   :  { %320 = vmatpush3.bf16.msra.mxu1 %v350_v4 }
   0x5   :  { %321 = vmatprep.subr.bf16.mxu1 %v384_v1 }
   0x6   :  { %302 = vmatpush3.bf16.msra.mxu0 %v343_v2 }
   0x7   :  { %303 = vmatprep.subr.bf16.mxu0 %v384_v1 }
   0x8   :  { %322 = vmatpush3.bf16.msra.mxu1 %v351_v6 }
   0xa   :  { %304 = vmatpush3.bf16.msra.mxu0 %v344_v3 }
   0xb   :  { %305 = vmatprep.subr.bf16.mxu0 %v384_v1 }
   0xe   :  { %306 = vmatpush3.bf16.msra.mxu0 %v345_v5 }
   0xf   :  { %307 = vmatprep.subr.bf16.mxu0 %v384_v1 }
  0x10   :  { %10 = vsyncpa [#allocation3], 0  ;;  %323 = vmatprep.subr.bf16.mxu1 %v384_v1  ;;  %v347_v9 = vld [vmem:[%s487_s1 + $0x28] sm:$0xff]   ;;  %v353_v10 = vld [vmem:[%s489_s3 + $0x18] sm:$0xff]   ;;  %s386_s29 = smov [#allocation2]   ;;  %vm247_vm1 = vcmask 17408  }
  0x11   :  { %324 = vmatpush3.bf16.msra.mxu1 %v352_v8  ;;  %v348_v11 = vld [vmem:[%s487_s1 + $0x30] sm:$0xff]   ;;  %v349_v12 = vld [vmem:[%s487_s1 + $0x38] sm:$0xff]   ;;  %v22_v13 = vld [vmem:[%s486_s0] sm:$0x1] }
  0x12   :  { %308 = vmatpush3.bf16.msra.mxu0 %v346_v7  ;;  %325 = vmatprep.subr.bf16.mxu1 %v384_v1  ;;  %v354_v14 = vld [vmem:[%s489_s3 + $0x20] sm:$0xff]   ;;  %v355_v15 = vld [vmem:[%s489_s3 + $0x28] sm:$0xff]   ;;  %v356_v16 = vld [vmem:[%s489_s3 + $0x30] sm:$0xff]  }
  0x13   :  { %309 = vmatprep.subr.bf16.mxu0 %v384_v1  ;;  %v357_v17 = vld [vmem:[%s489_s3 + $0x38] sm:$0xff]   ;;  %v263_v18 = vld [vmem:[%s488_s2] ss:$0 sm:$0xff]  ;;  %s255_s3 = sshll.u32 %s386_s29, 4  ;;  %s256_s3 = int_to_ptr.vmem [resolvable:$true] %s255_s3 }
  0x14   :  { %v272_v26 = vld [vmem:[%s490_s4] ss:$0 sm:$0xff]  ;;  %s360_s2 = scalar_lea.vmem %s256_s3, 32  ;;  %p365_p1 = scmp.lt.s32.totalorder %s256_s3, %s256_s3 }
  0x15   :  { %326 = vmatpush3.bf16.msra.mxu1 %v353_v10  ;;  %p361_p0 = scmp.ne.s32.totalorder %s256_s3, %s360_s2  ;;  %p366_p2 = scmp.lt.s32.totalorder %s360_s2, %s360_s2 }
  0x16   :  { %310 = vmatpush3.bf16.msra.mxu0 %v347_v9  ;;  %327 = vmatprep.subr.bf16.mxu1 %v384_v1 }
  0x17   :  { %311 = vmatprep.subr.bf16.mxu0 %v384_v1  ;;  %p367_p3 = por %p366_p2, %p365_p1 }
  0x19   :  { %328 = vmatpush3.bf16.msra.mxu1 %v354_v14  ;;  %p368_p4 = pnand %p367_p3, %p361_p0 }
  0x1a   :  { %312 = vmatpush3.bf16.msra.mxu0 %v348_v11  ;;  %329 = vmatprep.subr.bf16.mxu1 %v384_v1 }
  0x1b   :  { %313 = vmatprep.subr.bf16.mxu0 %v384_v1 }
  0x1d   :  { %330 = vmatpush3.bf16.msra.mxu1 %v355_v15 }
  0x1e   :  { %314 = vmatpush3.bf16.msra.mxu0 %v349_v12  ;;  %331 = vmatprep.subr.bf16.mxu1 %v384_v1 }
  0x21   :  { %316 = vmatmul.mubr.bf16.vlgmr.msra.gmra.mrb[0].mxu0 %v22_v13  ;;  %332 = vmatpush3.bf16.msra.mxu1 %v356_v16 }
  0x22   :  { %333 = vmatprep.subr.bf16.mxu1 %v384_v1 }
  0x25   :  { %334 = vmatpush3.bf16.msra.mxu1 %v357_v17 }
  0xf4   :  { %v128_v19 = vpop.f32.mrb[0].mxu0 }
  0xf5   :  { %v129_v20 = vadd.f32 %v263_v18, %v128_v19  ;;  %v317_v21 = vpop.f32.mrb[1].mxu0 }
  0xf6   :  { %v131_v22 = vpop.f32.mrb[2].mxu0 }
  0xf7   :  { %358 = vtanh.f32 %v129_v20  ;;  %v318_v23 = vpop.f32.mrb[3].mxu0 }
 0x101   :  { %v359_v24 = vpop.eup %358 }
 0x102   :  { %v135_v25 = vpack.c.bf16 %v359_v24, %v359_v24 }
 0x104   :  { %336 = vmatmul.mubr.bf16.vlgmr.msra.gmra.mrb[0].mxu1 %v135_v25 }
 0x1d7   :  { %v241_v27 = vpop.f32.mrb[0].mxu1 }
 0x1d8   :  { %v242_v28 = vadd.f32 %v272_v26, %v241_v27  ;;  %v337_v29 = vpop.f32.mrb[1].mxu1 }
 0x1d9   :  { %v244_v30 = vpop.f32.mrb[2].mxu1 }
 0x1da   :  { %v338_v31 = vpop.f32.mrb[3].mxu1  ;;  %248 = vst.msk [vmem:[#allocation2] sm:$0x3] %vm247_vm1, %v242_v28 }
 0x1db   :  { %371 = shalt.err (!%p368_p4)
}
 0x1dc   :  { %s372_s4 = scalar_lea.hbm %s491_s5, 32 }
 0x1dd   :  { %p373_p5 = scmp.ne.s32.totalorder %s491_s5, %s372_s4  ;;  %p376_p6 = scmp.lt.u32.totalorder %s372_s4, %s491_s5 }
 0x1df   :  { %p378_p7 = pnand %p376_p6, %p373_p5 }
 0x1e1   :  { %381 = shalt.err (!%p378_p7)
}
 0x1e2   :  { %258 = dma.vmem_to_hbm [thread:$0]  %s256_s3, 32, %s491_s5, [#allocation3]  }
 0x1e3   :  { %382 = dma.done.wait [#allocation3], 32  }
 0x1e4   :  { %383 = vsyncadd [#allocation3], 4294967264 }
 0x1e5   :  { %262 = vsyncpa [#allocation3], 1 }

// kernel: poem_classifier_forward.17
= control target key start
LH: loop header
LB: loop body
LE: loop exit
PB: predicated region body
PF: predicated region fallthrough
CT: control target
= control target key end

     0   :  { %s456_s1 = inlined_call_operand.vmem [shape: bf16[256,128], index: 1, kind: input, shape index: {}]   ;;  %s457_s0 = inlined_call_operand.vmem [shape: bf16[16,256], index: 0, kind: input, shape index: {}]   ;;  %s458_s3 = inlined_call_operand.vmem [shape: bf16[16,128], index: 3, kind: input, shape index: {}]   ;;  %s459_s2 = inlined_call_operand.vmem [shape: f32[1,128], index: 2, kind: input, shape index: {}]   ;;  %s460_s4 = inlined_call_operand.vmem [shape: f32[1,128], index: 4, kind: input, shape index: {}]   ;;  %s461_s5 = inlined_call_operand.vmem [shape: f32[1,128], index: 5, kind: input, shape index: {}]   ;;  %s462_s6 = inlined_call_operand.vmem [shape: bf16[16,128], index: 6, kind: output, shape index: {}]  }
   0x1   :  { %v329_v0 = vld [vmem:[%s456_s1 + $0x40] sm:$0xff]   ;;  %v331_v2 = vld [vmem:[%s456_s1 + $0x48] sm:$0xff]   ;;  %v333_v4 = vld [vmem:[%s456_s1 + $0x50] sm:$0xff]  }
   0x2   :  { %v330_v1 = vld [vmem:[%s456_s1] sm:$0xff]   ;;  %307 = vmatprep.subr.bf16.mxu0 %v329_v0  ;;  %v332_v3 = vld [vmem:[%s456_s1 + $0x8] sm:$0xff]   ;;  %v334_v5 = vld [vmem:[%s456_s1 + $0x10] sm:$0xff]  }
   0x3   :  { %308 = vmatpush3.bf16.msra.mxu0 %v330_v1  ;;  %v335_v6 = vld [vmem:[%s456_s1 + $0x58] sm:$0xff]   ;;  %v337_v8 = vld [vmem:[%s456_s1 + $0x60] sm:$0xff]   ;;  %v339_v10 = vld [vmem:[%s456_s1 + $0x68] sm:$0xff]  }
   0x4   :  { %309 = vmatprep.subr.bf16.mxu0 %v331_v2  ;;  %v336_v7 = vld [vmem:[%s456_s1 + $0x18] sm:$0xff]   ;;  %v338_v9 = vld [vmem:[%s456_s1 + $0x20] sm:$0xff]   ;;  %v340_v12 = vld [vmem:[%s456_s1 + $0x28] sm:$0xff]  }
   0x5   :  { %v347_v11 = vld [vmem:[%s457_s0 + $0x4] ss:$8 sps:$4 sm:$0xff]   ;;  %v341_v13 = vld [vmem:[%s456_s1 + $0x70] sm:$0xff]   ;;  %v343_v15 = vld [vmem:[%s456_s1 + $0x78] sm:$0xff]  }
   0x6   :  { %203 = vmatprep.mubr.bf16.mxu0 %v347_v11  ;;  %v342_v14 = vld [vmem:[%s456_s1 + $0x30] sm:$0xff]   ;;  %v344_v16 = vld [vmem:[%s456_s1 + $0x38] sm:$0xff]   ;;  %v345_v17 = vld [vmem:[%s457_s0] ss:$8 sps:$4 sm:$0xff]  }
   0x7   :  { %310 = vmatpush3.bf16.msra.mxu0 %v332_v3  ;;  %v299_v18 = vld [vmem:[%s458_s3] sm:$0xff]  }
   0x8   :  { %311 = vmatprep.subr.bf16.mxu0 %v333_v4  ;;  %v273_v20 = vld [vmem:[%s459_s2] ss:$0 sm:$0xff]  ;;  %v300_v24 = vunpack.c.l.bf16 %v299_v18  ;;  %v301_v30 = vunpack.c.h.bf16 %v299_v18 }
   0x9   :  { %v292_v48 = vld [vmem:[%s460_s4] ss:$0 sm:$0xff] }
   0xa   :  { %v293_v52 = vld [vmem:[%s461_s5] ss:$0 sm:$0xff] }
   0xb   :  { %312 = vmatpush3.bf16.msra.mxu0 %v334_v5 }
   0xc   :  { %313 = vmatprep.subr.bf16.mxu0 %v335_v6 }
   0xf   :  { %314 = vmatpush3.bf16.msra.mxu0 %v336_v7 }
  0x10   :  { %315 = vmatprep.subr.bf16.mxu0 %v337_v8 }
  0x13   :  { %316 = vmatpush3.bf16.msra.mxu0 %v338_v9 }
  0x14   :  { %317 = vmatprep.subr.bf16.mxu0 %v339_v10 }
  0x17   :  { %318 = vmatpush3.bf16.msra.mxu0 %v340_v12 }
  0x18   :  { %319 = vmatprep.subr.bf16.mxu0 %v341_v13 }
  0x1b   :  { %320 = vmatpush3.bf16.msra.mxu0 %v342_v14 }
  0x1c   :  { %321 = vmatprep.subr.bf16.mxu0 %v343_v15 }
  0x1f   :  { %322 = vmatpush3.bf16.msra.mxu0 %v344_v16 }
  0x22   :  { %204 = vmatmul.mubr.bf16.vlgmr.msra.gmra.mrb[0].mxu0 %v345_v17 }
  0xf5   :  { %v323_v19 = vpop.f32.mrb[0].mxu0 }
  0xf6   :  { %v324_v21 = vpop.f32.mrb[1].mxu0 }
  0xf7   :  { %v325_v22 = vadd.f32 %v324_v21, %v323_v19  ;;  %v326_v23 = vpop.f32.mrb[2].mxu0 }
  0xf8   :  { %v327_v25 = vpop.f32.mrb[3].mxu0 }
  0xf9   :  { %v206_v26 = vadd.f32 %v325_v22, %v273_v20  ;;  %v328_v27 = vadd.f32 %v327_v25, %v326_v23 }
  0xfb   :  { %v209_v28 = vadd.f32 %v328_v27, %v273_v20  ;;  %v216_v29 = vadd.f32 %v300_v24, %v206_v26 }
  0xfd   :  { %218 = vadd.xlane.f32.xlu0 %v216_v29  ;;  %v217_v31 = vadd.f32 %v301_v30, %v209_v28 }
 0x101   :  { %220 = vadd.xlane.f32.xlu0 %v217_v31 }
 0x18a   :  { %v219_v32 = vpop.xlane.xlu0 %218 }
 0x18b   :  { %v223_v33 = vmul.f32 0.0078125, %v219_v32 }
 0x18d   :  { %v225_v34 = vsub.f32 %v216_v29, %v223_v33 }
 0x18e   :  { %v221_v35 = vpop.xlane.xlu0 %220 }
 0x18f   :  { %v224_v36 = vmul.f32 0.0078125, %v221_v35  ;;  %v227_v37 = vmul.f32 %v225_v34, %v225_v34 }
 0x191   :  { %v226_v38 = vsub.f32 %v217_v31, %v224_v36  ;;  %229 = vadd.xlane.f32.xlu1 %v227_v37 }
 0x193   :  { %v228_v39 = vmul.f32 %v226_v38, %v226_v38 }
 0x195   :  { %231 = vadd.xlane.f32.xlu1 %v228_v39 }
 0x21e   :  { %v230_v40 = vpop.xlane.xlu1 %229 }
 0x21f   :  { %v233_v41 = vmul.f32 0.0078125, %v230_v40 }
 0x221   :  { %v235_v42 = vadd.f32 1e-12, %v233_v41 }
 0x222   :  { %v232_v43 = vpop.xlane.xlu1 %231 }
 0x223   :  { %348 = vrsqrt.f32 %v235_v42  ;;  %v234_v44 = vmul.f32 0.0078125, %v232_v43 }
 0x225   :  { %v236_v45 = vadd.f32 1e-12, %v234_v44 }
 0x227   :  { %350 = vrsqrt.f32 %v236_v45 }
 0x22d   :  { %v349_v46 = vpop.eup %348 }
 0x22e   :  { %v239_v47 = vmul.f32 %v349_v46, %v225_v34 }
 0x230   :  { %v248_v50 = vmul.f32 %v292_v48, %v239_v47 }
 0x231   :  { %v351_v49 = vpop.eup %350 }
 0x232   :  { %v240_v51 = vmul.f32 %v351_v49, %v226_v38  ;;  %v257_v54 = vadd.f32 %v293_v52, %v248_v50 }
 0x234   :  { %v249_v53 = vmul.f32 %v292_v48, %v240_v51 }
 0x236   :  { %v258_v55 = vadd.f32 %v293_v52, %v249_v53 }
 0x238   :  { %v305_v56 = vpack.c.bf16 %v258_v55, %v257_v54 }
 0x23a   :  { %306 = vst [vmem:[%s462_s6] sm:$0xff] %v305_v56  }

</bundles_post_ra>
